<compile_context>
chip_gen: v5e
topology: v5e:2x2
jax: 0.10.0
libtpu: 0.0.40
codegen_flags: <defaults>
</compile_context>

<pallas_src>
import math

import jax
import jax.numpy as jnp
from jax import lax
from jax.experimental import pallas as pl
from jax.experimental.pallas import tpu as pltpu

NEG_INF = -1.0e15  # same constant as mask_logits() in the PyTorch reference


# ----------------------------------------------------------------------------
# Fused CoAttention kernel (one grid step == one batch element)
# ----------------------------------------------------------------------------
def _coattention_kernel(c_ref, q_ref, cm_ref, qm_ref,
                        w1_ref, w2_ref, w3_ref, wr_ref, out_ref):
    c = c_ref[0]            # (Lc, D)  context,  model_dim on lanes
    q = q_ref[0]            # (Lq, D)  question, model_dim on lanes
    cm = cm_ref[0]          # (Lc, 1)  float 0/1 mask
    qm = qm_ref[0]          # (1, Lq)  float 0/1 mask
    w1 = w1_ref[...]        # (1, D)
    w2 = w2_ref[...]        # (1, D)
    w3 = w3_ref[...]        # (1, D)
    wr = wr_ref[...]        # (4D, D)  resizer weight, pre-transposed

    # contract the last (lane) dim of both operands == A @ B^T on the MXU
    dn = (((1,), (1,)), ((), ()))

    # Trilinear similarity:
    #   S[i,j] = c_i.w1 + q_j.w2 + (c_i*w3).q_j
    #          = sum_d (c_i[d]*w3[d] + w2[d]) * q_j[d]  +  c_i.w1
    s1 = jnp.sum(c * w1, axis=1, keepdims=True)                              # (Lc, 1)
    s = lax.dot_general(c * w3 + w2, q, dn,
                        preferred_element_type=jnp.float32) + s1             # (Lc, Lq)

    # masked softmax over the q axis (lanes)
    sq = s * qm + NEG_INF * (1.0 - qm)
    sq = sq - jnp.max(sq, axis=1, keepdims=True)
    eq = jnp.exp(sq)
    s_bar = eq / jnp.sum(eq, axis=1, keepdims=True)                          # (Lc, Lq)

    # masked softmax over the c axis (sublanes)
    sc = s * cm + NEG_INF * (1.0 - cm)
    sc = sc - jnp.max(sc, axis=0, keepdims=True)
    ec = jnp.exp(sc)
    s_bbar = ec / jnp.sum(ec, axis=0, keepdims=True)                         # (Lc, Lq)

    a = jnp.dot(s_bar, q, preferred_element_type=jnp.float32)                # (Lc, D)
    ss = lax.dot_general(s_bar, s_bbar, dn,
                         preferred_element_type=jnp.float32)                 # (Lc, Lc)
    b = jnp.dot(ss, c, preferred_element_type=jnp.float32)                   # (Lc, D)

    # [C_t, A, C_t*A, C_t*B] — each chunk is 128-lane aligned, concat is layout-free
    feat = jnp.concatenate([c, a, c * a, c * b], axis=-1)                    # (Lc, 4D)
    # TODO(synk): training-mode dropout on `feat` omitted (eval semantics).
    out_ref[0] = jnp.dot(feat, wr,
                         preferred_element_type=jnp.float32).astype(out_ref.dtype)


# ----------------------------------------------------------------------------
# Wrapper: PyTorch-compatible signature / layouts
# ----------------------------------------------------------------------------
def coattention_forward(C, Q, c_mask, q_mask, W0, Wr):
    """C: (B, D, Lc), Q: (B, D, Lq), c_mask: (B, Lc), q_mask: (B, Lq),
       W0: (3D,), Wr: (D, 4D) [Conv1d weight, kernel=1, bias=False].
       Returns (B, D, Lc) exactly like the PyTorch module."""
    Bsz, D, Lc = C.shape
    Lq = Q.shape[2]

    # layout plumbing (not compute): model_dim -> lane axis, masks -> 2D tiles
    ct = jnp.transpose(C, (0, 2, 1)).astype(jnp.float32)        # (B, Lc, D)
    qt = jnp.transpose(Q, (0, 2, 1)).astype(jnp.float32)        # (B, Lq, D)
    cm = c_mask.astype(jnp.float32)[:, :, None]                 # (B, Lc, 1)
    qm = q_mask.astype(jnp.float32)[:, None, :]                 # (B, 1, Lq)
    w1 = W0[0:D][None, :]
    w2 = W0[D:2 * D][None, :]
    w3 = W0[2 * D:3 * D][None, :]
    wrt = jnp.transpose(Wr)                                     # (4D, D)

    out_nld = pl.pallas_call(
        _coattention_kernel,
        out_shape=jax.ShapeDtypeStruct((Bsz, Lc, D), jnp.float32),
        grid=(Bsz,),
        in_specs=[
            pl.BlockSpec((1, Lc, D), lambda bb: (bb, 0, 0)),
            pl.BlockSpec((1, Lq, D), lambda bb: (bb, 0, 0)),
            pl.BlockSpec((1, Lc, 1), lambda bb: (bb, 0, 0)),
            pl.BlockSpec((1, 1, Lq), lambda bb: (bb, 0, 0)),
            pl.BlockSpec((1, D), lambda bb: (0, 0)),
            pl.BlockSpec((1, D), lambda bb: (0, 0)),
            pl.BlockSpec((1, D), lambda bb: (0, 0)),
            pl.BlockSpec((4 * D, D), lambda bb: (0, 0)),
        ],
        out_specs=pl.BlockSpec((1, Lc, D), lambda bb: (bb, 0, 0)),
        compiler_params=pltpu.CompilerParams(
            dimension_semantics=("parallel",)),
    )(ct, qt, cm, qm, w1, w2, w3, wrt)

    # PyTorch returns NCL (B, D, Lc); transpose outside so the kernel's output
    # block stays lane-dense (last dim = D, a multiple of 128).
    return jnp.transpose(out_nld, (0, 2, 1))


# ----------------------------------------------------------------------------
# Pure-JAX reference (mirrors the PyTorch forward), for the correctness check
# ----------------------------------------------------------------------------
def _mask_logits(x, mask):
    return x * mask + NEG_INF * (1.0 - mask)


def coattention_reference(C, Q, c_mask, q_mask, W0, Wr):
    hp = jax.lax.Precision.HIGHEST
    ct = jnp.transpose(C, (0, 2, 1))                            # (B, Lc, D)
    qt = jnp.transpose(Q, (0, 2, 1))                            # (B, Lq, D)
    Bsz, Lc, D = ct.shape
    Lq = qt.shape[1]
    ce = jnp.broadcast_to(ct[:, :, None, :], (Bsz, Lc, Lq, D))
    qe = jnp.broadcast_to(qt[:, None, :, :], (Bsz, Lc, Lq, D))
    sfeat = jnp.concatenate([ce, qe, ce * qe], axis=3)          # (B, Lc, Lq, 3D)
    s = jnp.einsum('blqk,k->blq', sfeat, W0, precision=hp)
    s_bar = jax.nn.softmax(_mask_logits(s, q_mask[:, None, :]), axis=2)
    s_bbar = jax.nn.softmax(_mask_logits(s, c_mask[:, :, None]), axis=1)
    a = jnp.einsum('blq,bqd->bld', s_bar, qt, precision=hp)
    ss = jnp.einsum('blq,bmq->blm', s_bar, s_bbar, precision=hp)
    b = jnp.einsum('blm,bmd->bld', ss, ct, precision=hp)
    feat = jnp.concatenate([ct, a, ct * a, ct * b], axis=2)     # (B, Lc, 4D)
    return jnp.einsum('bli,oi->bol', feat, Wr, precision=hp)    # (B, D, Lc)


if __name__ == "__main__":
    Bsz, D, Lc, Lq = 2, 128, 64, 48   # batch, model_dim, context len, question len

    key = jax.random.PRNGKey(0)
    kC, kQ, kW0, kWr = jax.random.split(key, 4)

    C = jax.random.normal(kC, (Bsz, D, Lc), jnp.float32)
    Q = jax.random.normal(kQ, (Bsz, D, Lq), jnp.float32)

    # realistic 0/1 padding masks (some positions masked out)
    c_lens = jnp.array([Lc, 50])
    q_lens = jnp.array([40, Lq])
    c_mask = (jnp.arange(Lc)[None, :] < c_lens[:, None]).astype(jnp.float32)
    q_mask = (jnp.arange(Lq)[None, :] < q_lens[:, None]).astype(jnp.float32)

    # parameters matching the PyTorch initializers (deterministic via PRNGKey(0))
    bound = 1.0 / math.sqrt(D)
    W0 = jax.random.uniform(kW0, (3 * D,), jnp.float32, -bound, bound)
    xav = math.sqrt(6.0 / (D + 4 * D))                 # xavier_uniform for Conv1d(4D->D)
    Wr = jax.random.uniform(kWr, (D, 4 * D), jnp.float32, -xav, xav)

    out = jax.block_until_ready(coattention_forward(C, Q, c_mask, q_mask, W0, Wr))
    ref = jax.block_until_ready(coattention_reference(C, Q, c_mask, q_mask, W0, Wr))

    assert out.shape == (Bsz, D, Lc), out.shape
    max_err = float(jnp.max(jnp.abs(out - ref)))
    assert jnp.allclose(out, ref, atol=1e-3, rtol=1e-3), max_err
    print("KERNEL_OK")
</pallas_src>

<mosaic_0001>
module attributes {stable_mosaic.version = 11 : i64} {
  func.func @_coattention_kernel(%arg0: i32, %arg1: memref<1x64x128xf32, #tpu.memory_space<vmem>>, %arg2: memref<1x48x128xf32, #tpu.memory_space<vmem>>, %arg3: memref<1x64x1xf32, #tpu.memory_space<vmem>>, %arg4: memref<1x1x48xf32, #tpu.memory_space<vmem>>, %arg5: memref<1x128xf32, #tpu.memory_space<vmem>>, %arg6: memref<1x128xf32, #tpu.memory_space<vmem>>, %arg7: memref<1x128xf32, #tpu.memory_space<vmem>>, %arg8: memref<512x128xf32, #tpu.memory_space<vmem>>, %arg9: memref<1x64x128xf32, #tpu.memory_space<vmem>>) attributes {dimension_semantics = [#tpu.dimension_semantics<parallel>], iteration_bounds = array<i64: 2>, scalar_prefetch = 0 : i64, scratch_operands = 0 : i64, tpu.core_type = #tpu.core_type<tc>, window_params = [{transform_indices = @transform_0, window_bounds = array<i64: 1, 64, 128>}, {transform_indices = @transform_1, window_bounds = array<i64: 1, 48, 128>}, {transform_indices = @transform_2, window_bounds = array<i64: 1, 64, 1>}, {transform_indices = @transform_3, window_bounds = array<i64: 1, 1, 48>}, {pipeline_mode = #tpu.pipeline_mode<synchronous>, transform_indices = @transform_4, window_bounds = array<i64: 1, 128>}, {pipeline_mode = #tpu.pipeline_mode<synchronous>, transform_indices = @transform_5, window_bounds = array<i64: 1, 128>}, {pipeline_mode = #tpu.pipeline_mode<synchronous>, transform_indices = @transform_6, window_bounds = array<i64: 1, 128>}, {pipeline_mode = #tpu.pipeline_mode<synchronous>, transform_indices = @transform_7, window_bounds = array<i64: 512, 128>}, {transform_indices = @transform_8, window_bounds = array<i64: 1, 64, 128>}]} {
    %c0 = arith.constant 0 : index
    %c0_0 = arith.constant 0 : index
    %c0_1 = arith.constant 0 : index
    %0 = vector.load %arg1[%c0, %c0_0, %c0_1] : memref<1x64x128xf32, #tpu.memory_space<vmem>>, vector<1x64x128xf32>
    %1 = vector.shape_cast %0 : vector<1x64x128xf32> to vector<64x128xf32>
    %c0_2 = arith.constant 0 : index
    %c0_3 = arith.constant 0 : index
    %c0_4 = arith.constant 0 : index
    %2 = vector.load %arg2[%c0_2, %c0_3, %c0_4] : memref<1x48x128xf32, #tpu.memory_space<vmem>>, vector<1x48x128xf32>
    %3 = vector.shape_cast %2 : vector<1x48x128xf32> to vector<48x128xf32>
    %c0_5 = arith.constant 0 : index
    %c0_6 = arith.constant 0 : index
    %c0_7 = arith.constant 0 : index
    %4 = vector.load %arg3[%c0_5, %c0_6, %c0_7] : memref<1x64x1xf32, #tpu.memory_space<vmem>>, vector<1x64x1xf32>
    %5 = vector.shape_cast %4 : vector<1x64x1xf32> to vector<64x1xf32>
    %c0_8 = arith.constant 0 : index
    %c0_9 = arith.constant 0 : index
    %c0_10 = arith.constant 0 : index
    %6 = vector.load %arg4[%c0_8, %c0_9, %c0_10] : memref<1x1x48xf32, #tpu.memory_space<vmem>>, vector<1x1x48xf32>
    %7 = vector.shape_cast %6 : vector<1x1x48xf32> to vector<1x48xf32>
    %c0_11 = arith.constant 0 : index
    %c0_12 = arith.constant 0 : index
    %8 = vector.load %arg5[%c0_11, %c0_12] : memref<1x128xf32, #tpu.memory_space<vmem>>, vector<1x128xf32>
    %c0_13 = arith.constant 0 : index
    %c0_14 = arith.constant 0 : index
    %9 = vector.load %arg6[%c0_13, %c0_14] : memref<1x128xf32, #tpu.memory_space<vmem>>, vector<1x128xf32>
    %c0_15 = arith.constant 0 : index
    %c0_16 = arith.constant 0 : index
    %10 = vector.load %arg7[%c0_15, %c0_16] : memref<1x128xf32, #tpu.memory_space<vmem>>, vector<1x128xf32>
    %c0_17 = arith.constant 0 : index
    %c0_18 = arith.constant 0 : index
    %11 = vector.load %arg8[%c0_17, %c0_18] : memref<512x128xf32, #tpu.memory_space<vmem>>, vector<512x128xf32>
    %12 = vector.broadcast %8 : vector<1x128xf32> to vector<64x128xf32>
    %13 = arith.mulf %1, %12 : vector<64x128xf32>
    %cst = arith.constant dense<0.000000e+00> : vector<64xf32>
    %14 = vector.multi_reduction <add>, %13, %cst [1] : vector<64x128xf32> to vector<64xf32>
    %15 = vector.shape_cast %14 : vector<64xf32> to vector<64x1xf32>
    %16 = vector.broadcast %10 : vector<1x128xf32> to vector<64x128xf32>
    %17 = arith.mulf %1, %16 : vector<64x128xf32>
    %18 = vector.broadcast %9 : vector<1x128xf32> to vector<64x128xf32>
    %19 = arith.addf %17, %18 : vector<64x128xf32>
    %cst_19 = arith.constant dense<0.000000e+00> : vector<64x48xf32>
    %20 = tpu.matmul %19, %3, %cst_19 {dimension_numbers = #tpu.dot_dimension_numbers<[1], [1], [0], [0], [0, 0, 1, 0], [], []>} : vector<64x128xf32>, vector<48x128xf32>, vector<64x48xf32> -> vector<64x48xf32>
    %21 = vector.broadcast %15 : vector<64x1xf32> to vector<64x48xf32>
    %22 = arith.addf %20, %21 : vector<64x48xf32>
    %23 = vector.broadcast %7 : vector<1x48xf32> to vector<64x48xf32>
    %24 = arith.mulf %22, %23 : vector<64x48xf32>
    %cst_20 = arith.constant 1.000000e+00 : f32
    %25 = vector.broadcast %cst_20 : f32 to vector<1x48xf32>
    %26 = arith.subf %25, %7 : vector<1x48xf32>
    %cst_21 = arith.constant -9.99999986E+14 : f32
    %27 = vector.broadcast %cst_21 : f32 to vector<1x48xf32>
    %28 = arith.mulf %27, %26 : vector<1x48xf32>
    %29 = vector.broadcast %28 : vector<1x48xf32> to vector<64x48xf32>
    %30 = arith.addf %24, %29 : vector<64x48xf32>
    %cst_22 = arith.constant dense<0xFF800000> : vector<64xf32>
    %31 = vector.multi_reduction <maximumf>, %30, %cst_22 [1] : vector<64x48xf32> to vector<64xf32>
    %32 = vector.shape_cast %31 : vector<64xf32> to vector<64x1xf32>
    %33 = vector.broadcast %32 : vector<64x1xf32> to vector<64x48xf32>
    %34 = arith.subf %30, %33 : vector<64x48xf32>
    %35 = math.exp %34 : vector<64x48xf32>
    %cst_23 = arith.constant dense<0.000000e+00> : vector<64xf32>
    %36 = vector.multi_reduction <add>, %35, %cst_23 [1] : vector<64x48xf32> to vector<64xf32>
    %37 = vector.shape_cast %36 : vector<64xf32> to vector<64x1xf32>
    %38 = vector.broadcast %37 : vector<64x1xf32> to vector<64x48xf32>
    %39 = arith.divf %35, %38 : vector<64x48xf32>
    %40 = vector.broadcast %5 : vector<64x1xf32> to vector<64x48xf32>
    %41 = arith.mulf %22, %40 : vector<64x48xf32>
    %cst_24 = arith.constant 1.000000e+00 : f32
    %42 = vector.broadcast %cst_24 : f32 to vector<64x1xf32>
    %43 = arith.subf %42, %5 : vector<64x1xf32>
    %cst_25 = arith.constant -9.99999986E+14 : f32
    %44 = vector.broadcast %cst_25 : f32 to vector<64x1xf32>
    %45 = arith.mulf %44, %43 : vector<64x1xf32>
    %46 = vector.broadcast %45 : vector<64x1xf32> to vector<64x48xf32>
    %47 = arith.addf %41, %46 : vector<64x48xf32>
    %cst_26 = arith.constant dense<0xFF800000> : vector<48xf32>
    %48 = vector.multi_reduction <maximumf>, %47, %cst_26 [0] : vector<64x48xf32> to vector<48xf32>
    %49 = vector.shape_cast %48 : vector<48xf32> to vector<1x48xf32>
    %50 = vector.broadcast %49 : vector<1x48xf32> to vector<64x48xf32>
    %51 = arith.subf %47, %50 : vector<64x48xf32>
    %52 = math.exp %51 : vector<64x48xf32>
    %cst_27 = arith.constant dense<0.000000e+00> : vector<48xf32>
    %53 = vector.multi_reduction <add>, %52, %cst_27 [0] : vector<64x48xf32> to vector<48xf32>
    %54 = vector.shape_cast %53 : vector<48xf32> to vector<1x48xf32>
    %55 = vector.broadcast %54 : vector<1x48xf32> to vector<64x48xf32>
    %56 = arith.divf %52, %55 : vector<64x48xf32>
    %cst_28 = arith.constant dense<0.000000e+00> : vector<64x128xf32>
    %57 = tpu.matmul %39, %3, %cst_28 {dimension_numbers = #tpu.dot_dimension_numbers<[1], [0], [0], [1], [0, 0, 1, 1], [], []>} : vector<64x48xf32>, vector<48x128xf32>, vector<64x128xf32> -> vector<64x128xf32>
    %cst_29 = arith.constant dense<0.000000e+00> : vector<64x64xf32>
    %58 = tpu.matmul %39, %56, %cst_29 {dimension_numbers = #tpu.dot_dimension_numbers<[1], [1], [0], [0], [0, 0, 1, 0], [], []>} : vector<64x48xf32>, vector<64x48xf32>, vector<64x64xf32> -> vector<64x64xf32>
    %cst_30 = arith.constant dense<0.000000e+00> : vector<64x128xf32>
    %59 = tpu.matmul %58, %1, %cst_30 {dimension_numbers = #tpu.dot_dimension_numbers<[1], [0], [0], [1], [0, 0, 1, 1], [], []>} : vector<64x64xf32>, vector<64x128xf32>, vector<64x128xf32> -> vector<64x128xf32>
    %60 = arith.mulf %1, %57 : vector<64x128xf32>
    %61 = arith.mulf %1, %59 : vector<64x128xf32>
    %62 = tpu.concatenate %1, %57, %60, %61 in 1 : vector<64x128xf32>, vector<64x128xf32>, vector<64x128xf32>, vector<64x128xf32> -> vector<64x512xf32>
    %cst_31 = arith.constant dense<0.000000e+00> : vector<64x128xf32>
    %63 = tpu.matmul %62, %11, %cst_31 {dimension_numbers = #tpu.dot_dimension_numbers<[1], [0], [0], [1], [0, 0, 1, 1], [], []>} : vector<64x512xf32>, vector<512x128xf32>, vector<64x128xf32> -> vector<64x128xf32>
    %c0_32 = arith.constant 0 : index
    %c0_33 = arith.constant 0 : index
    %c0_34 = arith.constant 0 : index
    %64 = vector.load %arg9[%c0_32, %c0_33, %c0_34] : memref<1x64x128xf32, #tpu.memory_space<vmem>>, vector<1x64x128xf32>
    %65 = vector.shape_cast %64 : vector<1x64x128xf32> to vector<64x128xf32>
    %66 = vector.shape_cast %63 : vector<64x128xf32> to vector<1x64x128xf32>
    tpu.vector_store %arg9[%c0_32, %c0_33, %c0_34], %66 {strides = array<i32>} : memref<1x64x128xf32, #tpu.memory_space<vmem>>, vector<1x64x128xf32>,
    return
  }
  func.func @transform_0(%arg0: i32) -> (i32, i32, i32) {
    %c0_i32 = arith.constant 0 : i32
    %c0_i32_0 = arith.constant 0 : i32
    %c0_i32_1 = arith.constant 0 : i32
    return %arg0, %c0_i32, %c0_i32_0 : i32, i32, i32
  }
  func.func @transform_1(%arg0: i32) -> (i32, i32, i32) {
    %c0_i32 = arith.constant 0 : i32
    %c0_i32_0 = arith.constant 0 : i32
    %c0_i32_1 = arith.constant 0 : i32
    return %arg0, %c0_i32, %c0_i32_0 : i32, i32, i32
  }
  func.func @transform_2(%arg0: i32) -> (i32, i32, i32) {
    %c0_i32 = arith.constant 0 : i32
    %c0_i32_0 = arith.constant 0 : i32
    %c0_i32_1 = arith.constant 0 : i32
    return %arg0, %c0_i32, %c0_i32_0 : i32, i32, i32
  }
  func.func @transform_3(%arg0: i32) -> (i32, i32, i32) {
    %c0_i32 = arith.constant 0 : i32
    %c0_i32_0 = arith.constant 0 : i32
    %c0_i32_1 = arith.constant 0 : i32
    return %arg0, %c0_i32, %c0_i32_0 : i32, i32, i32
  }
  func.func @transform_4(%arg0: i32) -> (i32, i32) {
    %c0_i32 = arith.constant 0 : i32
    %c0_i32_0 = arith.constant 0 : i32
    %c0_i32_1 = arith.constant 0 : i32
    return %c0_i32, %c0_i32_0 : i32, i32
  }
  func.func @transform_5(%arg0: i32) -> (i32, i32) {
    %c0_i32 = arith.constant 0 : i32
    %c0_i32_0 = arith.constant 0 : i32
    %c0_i32_1 = arith.constant 0 : i32
    return %c0_i32, %c0_i32_0 : i32, i32
  }
  func.func @transform_6(%arg0: i32) -> (i32, i32) {
    %c0_i32 = arith.constant 0 : i32
    %c0_i32_0 = arith.constant 0 : i32
    %c0_i32_1 = arith.constant 0 : i32
    return %c0_i32, %c0_i32_0 : i32, i32
  }
  func.func @transform_7(%arg0: i32) -> (i32, i32) {
    %c0_i32 = arith.constant 0 : i32
    %c0_i32_0 = arith.constant 0 : i32
    %c0_i32_1 = arith.constant 0 : i32
    return %c0_i32, %c0_i32_0 : i32, i32
  }
  func.func @transform_8(%arg0: i32) -> (i32, i32, i32) {
    %c0_i32 = arith.constant 0 : i32
    %c0_i32_0 = arith.constant 0 : i32
    %c0_i32_1 = arith.constant 0 : i32
    return %arg0, %c0_i32, %c0_i32_0 : i32, i32, i32
  }
}

</mosaic_0001>

<bundles_post_ra>
// kernel: tpu_custom_call.1
= control target key start
LH: loop header
LB: loop body
LE: loop exit
PB: predicated region body
PF: predicated region fallthrough
CT: control target
= control target key end

     0   :  { %s2397_s0 = inlined_call_operand.vmem [shape: f32[2,64,128], index: 0, kind: input, shape index: {}]   ;;  %s2398_s1 = inlined_call_operand.hbm [shape: f32[2,48,128], index: 1, kind: input, shape index: {}]   ;;  %s2399_s2 = inlined_call_operand.vmem [shape: f32[2,64,1], index: 2, kind: input, shape index: {}]   ;;  %s2400_s3 = inlined_call_operand.vmem [shape: f32[2,1,48], index: 3, kind: input, shape index: {}]   ;;  %s2401_s4 = inlined_call_operand.vmem [shape: f32[1,128], index: 4, kind: input, shape index: {}]   ;;  %s2402_s5 = inlined_call_operand.vmem [shape: f32[1,128], index: 5, kind: input, shape index: {}]   ;;  %s2403_s6 = inlined_call_operand.vmem [shape: f32[1,128], index: 6, kind: input, shape index: {}]   ;;  %s2404_s7 = inlined_call_operand.hbm [shape: f32[512,128], index: 7, kind: input, shape index: {}]   ;;  %s2405_s8 = inlined_call_operand.hbm [shape: f32[2,64,128], index: 8, kind: output, shape index: {}]  }
   0x1   :  { %2411 = sst [smem:[#allocation14_spill]] %s2404_s7 }
   0x2   :  { %13 = vsyncpa [#allocation3], 0 }
   0x3   :  { %15 = vsyncpa [#allocation3 + $0x1], 0 }
   0x4   :  { %16 = vsyncpa [#allocation6], 0 }
   0x5   :  { %17 = vsyncpa [#allocation4], 0 }
   0x6   :  { %19 = vsyncpa [#allocation4 + $0x1], 0  ;;  %s1891_s27 = smov 0   ;;  %s1893_s28 = smov 0  }
   0x7   :  { %s1895_s29 = smov 0   ;;  %s1897_s30 = smov 0  }
   0x8 LB: > { %2412 = sst [smem:[#allocation11_spill]] %s1834_s29  ;;  %s1912_s9 = sadd.s32 4294967295, %s1838_s30   ;;  %s1838_s30 = sphi %s1897_s30, %s2424_s30   ;;  %s1834_s29 = sphi %s1895_s29, %s2426_s29   ;;  %s1830_s28 = sphi %s1893_s28, %s2428_s28   ;;  %s1826_s27 = sphi %s1891_s27, %s2427_s27  }
   0x9   : > { %s1510_s10 = sadd.s32 4294967294, %s1838_s30   ;;  %p71_p0 = scmp.ne.s32.totalorder %s1830_s28, %s1826_s27 }
   0xa   : > { %p72_p1 = scmp.eq.s32.totalorder %s1912_s9, 0  ;;  %p231_p2 = scmp.eq.s32.totalorder %s1912_s9, 1 }
   0xb   : > { %p237_p3 = scmp.eq.s32.totalorder %s1510_s10, 1  ;;  %p1511_p5 = scmp.ge.s32.totalorder %s1838_s30, 1 }
   0xc   : > { %p1921_p4 = por %p72_p1, %p71_p0  ;;  %p244_p7 = scmp.lt.s32.totalorder %s1838_s30, 3 }
   0xd   : > { %p1926_p6 = por %p237_p3, %p71_p0  ;;  %s2415_s7 = sld [smem:[#allocation14_spill]] }
   0xe   : > { %p1934_p8 = pnand %p1511_p5, %p244_p7  ;;  %s1840_s17 = smov [#allocation5]  }
   0xf   : > { %s266_s18 = sshll.u32 %s1840_s17, 4  ;;  %s1944_s19 = sadd.s32 1, %s1838_s30   ;;  %s267_s18 = int_to_ptr.vmem [resolvable:$true] %s266_s18 }
  0x10   : > { %p1589_p9 = pneg %p1934_p8  ;;  %2417 = sst [smem:[#allocation12_spill]] %s1944_s19 }
  0x11   : > { %s2406_s20 = smov 128   ;;  %s2407_s21 = smov 8  }
  0x12   : > { %p1590_p10 = pnand %p1589_p9, %p72_p1  ;;  %s55_s22 = ssub.s32 %s1838_s30, %s1944_s19 }
  0x13   : > { %s264_s15 = sshll.u32 %s2415_s7, 4  ;;  %s58_s23 = sadd.s32 1, %s1834_s29  ;;  %s265_s15 = int_to_ptr.hbm [resolvable:$true] %s264_s15 }
  0x14   : > { %1592 = dma.hbm_to_vmem [thread:$0]  (!%p1590_p10), %s265_s15, 8192, %s267_s18, [#allocation6], %s2406_s20, %s2406_s20, %s2407_s21  }
  0x15   : > { %p56_p12 = scmp.eq.s32.totalorder %s55_s22, 0  ;;  %p65_p13 = scmp.ne.s32.totalorder %s1834_s29, %s1830_s28 }
  0x16   : > { %p66_p0 = scmp.eq.s32.totalorder %s1838_s30, 0  ;;  %p1602_p3 = scmp.lt.s32.totalorder %s1838_s30, 2 }
  0x17   : > { %s1957_s24 = scalar_select %p56_p12, %s1834_s29, %s58_s23  }
  0x18   : > { %p67_p5 = por %p66_p0, %p65_p13  ;;  %p1961_p7 = por %p231_p2, %p65_p13 }
  0x19   : > { %2418 = sst [smem:[#allocation13_spill]] %s1957_s24  ;;  %s288_s26 = sand.u32 1, %s1834_s29  }
  0x1a   : > { %s1579_s10 = smul.u32 48, %s1838_s30  ;;  %p1970_p9 = pnand %p1602_p3, %p67_p5 }
  0x1b   : > { %s1578_s13 = smul.u32 48, %s288_s26  ;;  %s289_s21 = scalar_lea.sflag [#allocation3], %s288_s26 }
  0x1c   : > { %s297_s15 = scalar_lea.hbm %s2398_s1, %s1579_s10  ;;  %p1742_p10 = pneg %p1970_p9 }
  0x1d   : > { %s298_s22 = sshll.u32 %s297_s15, 4  ;;  %s292_s23 = scalar_lea.vmem [#allocation2], %s1578_s13  ;;  %s299_s22 = int_to_ptr.hbm [resolvable:$true] %s298_s22 }
  0x1e   : > { %s300_s20 = sshll.u32 %s292_s23, 4  ;;  %s1738_s7 = sshra.s32 %s299_s22, 4  ;;  %s301_s20 = int_to_ptr.vmem [resolvable:$true] %s300_s20  ;;  %s1739_s7 = int_to_ptr.hbm [resolvable:$true] %s1738_s7 }
  0x1f   : > { %s1740_s24 = scalar_lea.hbm %s1739_s7, 48  ;;  %s1745_s17 = scalar_lea.hbm %s2398_s1, 96 }
  0x20   : > { %p1741_p2 = scmp.ne.s32.totalorder %s1739_s7, %s1740_s24  ;;  %p1746_p0 = scmp.lt.s32.totalorder %s1739_s7, %s2398_s1 }
  0x21   : > { %p1747_p3 = scmp.lt.s32.totalorder %s1745_s17, %s1740_s24 }
  0x22   : > { %p1743_p12 = pnand %p1742_p10, %p1741_p2 }
  0x23   : > { %p1748_p5 = por %p1747_p3, %p1746_p0 }
  0x24   : > { %p1744_p13 = pneg %p1743_p12 }
  0x26   : > { %p1749_p11 = pnand %p1748_p5, %p1744_p13 }
  0x28   : > { %1752 = shalt.err (!%p1749_p11)
}
  0x29   : > { %s2421_s26 = smov 8   ;;  %s2422_s13 = smov 128  }
  0x2a   : > { %1596 = dma.hbm_to_vmem [thread:$0]  (!%p1970_p9), %s299_s22, 768, %s301_s20, %s289_s21, %s2422_s13, %s2422_s13, %s2421_s26  }
  0x2b   : > { %326 = sbr.rel (%p1934_p8) target bundleno = 932 (0x3a4), region = 52  ;;  %s1990_s15 = sand.u32 (!%p1934_p8), 1, %s1830_s28  }
  0x2c   : > { %s1580_s7 = smul.u32 (!%p1934_p8), 48, %s1990_s15  ;;  %s329_s29 = scalar_lea.sflag (!%p1934_p8), [#allocation3], %s1990_s15 }
  0x2e   : > { %s1994_s19 = scalar_lea.vmem (!%p1934_p8), [#allocation2], %s1580_s7 }
  0x30   : > { %1813 = dma.done.wait (%p1921_p4), %s329_s29, 768  }
  0x31   : > { %1815 = vsyncadd (%p1921_p4), %s329_s29, 4294966528 }
  0x32   : > { %1817 = dma.done.wait (%p72_p1), [#allocation6], 8192  }
  0x33   : > { %1819 = vsyncadd (%p72_p1), [#allocation6], 4294959104  ;;  %p384_p8 = scmp.lt.s32.totalorder %s1912_s9, 1  ;;  %v410_v0 = vld [vmem:[%s1994_s19 + $0x28] sm:$0xff]  ;;  %v1646_v2 = vld [vmem:[%s2401_s4] ss:$0 sm:$0xff] }
  0x34   : > { %546 = vmatpush.xpose.msra.mxu0 %v410_v0  ;;  %v1843_v3 = vmov 0   ;;  %v409_v4 = vld [vmem:[%s1994_s19 + $0x20] sm:$0xff]  ;;  %1028 = vmatpush.msra.mxu1 %v410_v0  ;;  %v408_v10 = vld [vmem:[%s1994_s19 + $0x18] sm:$0xff]  ;;  %v407_v17 = vld [vmem:[%s1994_s19 + $0x10] sm:$0xff]  ;;  %vm601_vm0 = vcmask 392192   ;;  %s1561_s11 = sshll.u32 %s1912_s9, 6 }
  0x35   : > { %s2006_s16 = scalar_select %p384_p8, %s1912_s9, 1  ;;  %1643 = vset.pattern.permute.xlu2 %v1843_v3  ;;  %1644 = vset.pattern.permute.xlu0 %v1843_v3  ;;  %v2046_v20 = vld [vmem:[%s2403_s6] ss:$0 sm:$0xff]  ;;  %v406_v21 = vld [vmem:[%s1994_s19 + $0x8] sm:$0xff] }
  0x36   : > { %1645 = vset.pattern.permute.xlu1 %v1843_v3  ;;  %1029 = vmatpush.msra.mxu1 %v409_v4  ;;  %v405_v22 = vld [vmem:[%s1994_s19] sm:$0xff]  ;;  %s1390_s22 = scalar_lea.hbm %s2405_s8, %s1561_s11  ;;  %s1379_s14 = scalar_lea.sflag [#allocation4], %s1990_s15 }
  0x37   : > { %s1559_s20 = sshll.u32 %s2006_s16, 6  ;;  %v2056_v24 = vld [vmem:[%s2402_s5] ss:$0 sm:$0xff]  ;;  %s1393_s10 = sshll.u32 %s1390_s22, 4  ;;  %s1394_s10 = int_to_ptr.hbm [resolvable:$true] %s1393_s10 }
  0x38   : > { %s2014_s24 = scalar_lea.vmem %s2397_s0, %s1559_s20  ;;  %547 = vmatpush.xpose.msra.mxu0 %v409_v4  ;;  %1030 = vmatpush.msra.mxu1 %v408_v10  ;;  %s2068_s7 = scalar_lea.vmem %s2399_s2, %s1559_s20 }
  0x39   : > { %v2018_v1 = vld [vmem:[%s2014_s24 + $0x20] sm:$0xff]  ;;  %v399_v5 = vld [vmem:[%s2014_s24 + $0x10] sm:$0xff]  ;;  %v2029_v11 = vld [vmem:[%s2014_s24 + $0x28] sm:$0xff]  ;;  %s396_s20 = scalar_lea.vmem %s2400_s3, %s2006_s16  ;;  %s1517_s16 = sshll.u32 %s1990_s15, 6 }
  0x3a   : > { %v397_v6 = vld [vmem:[%s2014_s24] sm:$0xff]  ;;  %v494_v7 = vmul.f32 %v1646_v2, %v2018_v1  ;;  %v492_v8 = vmul.f32 %v1646_v2, %v399_v5  ;;  %v2032_v12 = vld [vmem:[%s2014_s24 + $0x38] sm:$0xff]  ;;  %v398_v14 = vld [vmem:[%s2014_s24 + $0x8] sm:$0xff]  ;;  %v495_v15 = vmul.f32 %v1646_v2, %v2029_v11  ;;  %1031 = vmatpush.msra.mxu1 %v407_v17  ;;  %v519_v30 = vmul.f32 %v2046_v20, %v399_v5  ;;  %s2353_s21 = scalar_lea.vmem [#allocation7], %s1517_s16  ;;  %s1782_s17 = sshra.s32 %s1394_s10, 4  ;;  %s1783_s17 = int_to_ptr.hbm [resolvable:$true] %s1782_s17 }
  0x3b   : > { %v490_v9 = vmul.f32 %v1646_v2, %v397_v6  ;;  %v400_v13 = vld [vmem:[%s2014_s24 + $0x18] sm:$0xff]  ;;  %1157 = vmatpush.msra.mxu3 %v2032_v12  ;;  %v2039_v16 = vld [vmem:[%s2014_s24 + $0x30] sm:$0xff]  ;;  %v491_v19 = vmul.f32 %v1646_v2, %v398_v14  ;;  %v517_v23 = vmul.f32 %v2046_v20, %v397_v6  ;;  %v497_v25 = vmul.f32 %v1646_v2, %v2032_v12  ;;  %v411_v31 = vld [vmem:[%s2068_s7] sm:$0xff]  ;;  %s1391_s23 = sshll.u32 %s2353_s21, 4  ;;  %s1784_s9 = scalar_lea.hbm %s1783_s17, 64  ;;  %s1392_s23 = int_to_ptr.vmem [resolvable:$true] %s1391_s23 }
  0x3c   : > { %506 = vadd.xlane.f32.xlu2 %v494_v7  ;;  %502 = vadd.xlane.f32.xlu1 %v492_v8  ;;  %v493_v18 = vmul.f32 %v1646_v2, %v400_v13  ;;  %v496_v26 = vmul.f32 %v1646_v2, %v2039_v16  ;;  %v518_v28 = vmul.f32 %v2046_v20, %v398_v14  ;;  %v412_v33 = vld [vmem:[%s2068_s7 + $0x8] sm:$0xff]  ;;  %v842_v35 = vsub.f32 1.0, %v411_v31  ;;  %v414_v36 = vld [vmem:[%s2068_s7 + $0x18] sm:$0xff]  ;;  %v413_v37 = vld [vmem:[%s2068_s7 + $0x10] sm:$0xff]  ;;  %p1785_p1 = scmp.ne.s32.totalorder %s1783_s17, %s1784_s9  ;;  %p1789_p9 = scmp.lt.s32.totalorder %s1783_s17, %s2405_s8 }
  0x3d   : > { %498 = vadd.xlane.f32.xlu0 %v490_v9  ;;  %548 = vmatpush.xpose.msra.mxu0 %v408_v10  ;;  %v528_v27 = vadd.f32 %v2056_v24, %v517_v23  ;;  %v530_v32 = vadd.f32 %v2056_v24, %v519_v30  ;;  %v520_v34 = vmul.f32 %v2046_v20, %v400_v13  ;;  %v845_v41 = vsub.f32 1.0, %v414_v36  ;;  %v415_v42 = vld [vmem:[%s2068_s7 + $0x20] sm:$0xff]  ;;  %v416_v43 = vld [vmem:[%s2068_s7 + $0x28] sm:$0xff]  ;;  %v417_v47 = vld [vmem:[%s2068_s7 + $0x30] sm:$0xff] }
  0x3e   : > { %1158 = vmatpush.msra.mxu3 %v2039_v16  ;;  %1032 = vmatpush.msra.mxu1 %v406_v21  ;;  %v529_v29 = vadd.f32 %v2056_v24, %v518_v28  ;;  %v850_v39 = vmul.f32 -1e+15, %v842_v35  ;;  %v521_v40 = vmul.f32 %v2046_v20, %v2018_v1  ;;  %v522_v46 = vmul.f32 %v2046_v20, %v2029_v11  ;;  %v418_v49 = vld [vmem:[%s2068_s7 + $0x38] sm:$0xff]  ;;  %v419_v4 = vld [vmem:[%s396_s20] sm:$0x1]  ;;  %p1786_p4 = pnand %p1785_p1, %p1961_p7  ;;  %s1788_s7 = scalar_lea.hbm %s2405_s8, 128 }
  0x3f   : > { %v531_v38 = vadd.f32 %v2056_v24, %v520_v34  ;;  %v853_v45 = vmul.f32 -1e+15, %v845_v41  ;;  %v848_v48 = vsub.f32 1.0, %v417_v47  ;;  %v843_v51 = vsub.f32 1.0, %v412_v33  ;;  %v2098_v10 = vld [vmem:[%s396_s20] ss:$0 sm:$0xff]  ;;  %p1790_p2 = scmp.lt.s32.totalorder %s1788_s7, %s1784_s9 }
  0x40   : > { %1159 = vmatpush.msra.mxu3 %v2029_v11  ;;  %1033 = vmatpush.msra.mxu1 %v405_v22  ;;  %v532_v44 = vadd.f32 %v2056_v24, %v521_v40  ;;  %v533_v50 = vadd.f32 %v2056_v24, %v522_v46  ;;  %v844_v53 = vsub.f32 1.0, %v413_v37  ;;  %v523_v54 = vmul.f32 %v2046_v20, %v2039_v16  ;;  %p1787_p11 = pneg %p1786_p4 }
  0x41   : > { %549 = vmatpush.xpose.msra.mxu0 %v407_v17  ;;  %v856_v52 = vmul.f32 -1e+15, %v848_v48  ;;  %v851_v55 = vmul.f32 -1e+15, %v843_v51  ;;  %v846_v58 = vsub.f32 1.0, %v415_v42  ;;  %v847_v59 = vsub.f32 1.0, %v416_v43  ;;  %p1791_p10 = por %p1790_p2, %p1789_p9 }
  0x42   : > { %1160 = vmatpush.msra.mxu3 %v2018_v1  ;;  %v852_v56 = vmul.f32 -1e+15, %v844_v53  ;;  %v534_v57 = vadd.f32 %v2056_v24, %v523_v54  ;;  %v524_v60 = vmul.f32 %v2046_v20, %v2032_v12  ;;  %v849_v0 = vsub.f32 1.0, %v418_v49 }
  0x43   : > { %v854_v61 = vmul.f32 -1e+15, %v846_v58  ;;  %v855_v62 = vmul.f32 -1e+15, %v847_v59  ;;  %p1792_p12 = pnand %p1791_p10, %p1787_p11 }
  0x44   : > { %508 = vadd.xlane.f32.xlu2 %v495_v15  ;;  %504 = vadd.xlane.f32.xlu1 %v493_v18  ;;  %v535_v63 = vadd.f32 %v2056_v24, %v524_v60  ;;  %v857_v1 = vmul.f32 -1e+15, %v849_v0 }
  0x45   : > { %500 = vadd.xlane.f32.xlu0 %v491_v19  ;;  %550 = vmatpush.xpose.msra.mxu0 %v406_v21 }
  0x46   : > { %1161 = vmatpush.msra.mxu3 %v400_v13 }
  0x48   : > { %1162 = vmatpush.msra.mxu3 %v399_v5 }
  0x49   : > { %551 = vmatpush.xpose.msra.mxu0 %v405_v22 }
  0x4a   : > { %1163 = vmatpush.msra.mxu3 %v398_v14 }
  0x4c   : > { %512 = vadd.xlane.f32.xlu1 %v497_v25  ;;  %552 = vmatmul.f32.vlgmr.msra.gmra.mxu0 %v528_v27 }
  0x4d   : > { %510 = vadd.xlane.f32.xlu0 %v496_v26  ;;  %1164 = vmatpush.msra.mxu3 %v397_v6  ;;  %v588_v6 = vsub.f32 1.0, %v419_v4 }
  0x4f   : > { %v589_v8 = vmul.f32 -1e+15, %v588_v6 }
  0x51   : > { %v2102_v13 = vperm.slane %v589_v8, 0 }
  0x54   : > { %555 = vmatmul.f32.gmra.mxu0 %v529_v29 }
  0x5c   : > { %796 = vperm.xlu2 %1643, %v411_v31   ;;  %558 = vmatmul.f32.gmra.mxu0 %v530_v32 }
  0x61   : > { %801 = vperm.xlu0 %1644, %v412_v33  }
  0x64   : > { %811 = vperm.xlu2 %1643, %v414_v36   ;;  %561 = vmatmul.f32.gmra.mxu0 %v531_v38 }
  0x65   : > { %806 = vperm.xlu1 %1645, %v413_v37  }
  0x69   : > { %860 = vperm.xlu0 %1644, %v850_v39  }
  0x6c   : > { %816 = vperm.xlu2 %1643, %v415_v42   ;;  %564 = vmatmul.f32.gmra.mxu0 %v532_v44 }
  0x6d   : > { %821 = vperm.xlu1 %1645, %v416_v43  }
  0x71   : > { %875 = vperm.xlu0 %1644, %v853_v45  }
  0x74   : > { %826 = vperm.xlu2 %1643, %v417_v47   ;;  %567 = vmatmul.f32.gmra.mxu0 %v533_v50 }
  0x75   : > { %831 = vperm.xlu1 %1645, %v418_v49  }
  0x79   : > { %890 = vperm.xlu0 %1644, %v856_v52  }
  0x7c   : > { %865 = vperm.xlu2 %1643, %v851_v55   ;;  %570 = vmatmul.f32.gmra.mxu0 %v534_v57 }
  0x7d   : > { %870 = vperm.xlu1 %1645, %v852_v56  }
  0x84   : > { %880 = vperm.xlu2 %1643, %v854_v61   ;;  %573 = vmatmul.f32.gmra.mxu0 %v535_v63 }
  0x85   : > { %885 = vperm.xlu1 %1645, %v855_v62  }
  0x8c   : > { %895 = vperm.xlu2 %1643, %v857_v1  }
  0xaf   : > { %v507_v2 = vpop.xlane.xlu2 %506  ;;  %v503_v3 = vpop.xlane.xlu1 %502 }
  0xb0   : > { %v499_v9 = vpop.xlane.xlu0 %498 }
  0xb7   : > { %v509_v5 = vpop.xlane.xlu2 %508  ;;  %v505_v7 = vpop.xlane.xlu1 %504 }
  0xb8   : > { %v501_v19 = vpop.xlane.xlu0 %500 }
  0xbf   : > { %v2100_v11 = vpop.permute.xlu2 %796  ;;  %v2108_v16 = vpop.xlane.xlu1 %512 }
  0xc0   : > { %v511_v29 = vpop.xlane.xlu0 %510 }
  0xc7   : > { %v812_v22 = vpop.permute.xlu2 %811 }
  0xc9   : > { %v553_v12 = vpop.f32.mrf.mxu0 }
  0xca   : > { %v2104_v14 = vadd.f32 %v553_v12, %v499_v9 }
  0xcc   : > { %v580_v15 = vmul.f32 %v2098_v10, %v2104_v14 }
  0xce   : > { %v2111_v17 = vadd.f32 %v2102_v13, %v580_v15 }
  0xcf   : > { %v817_v31 = vpop.permute.xlu2 %816 }
  0xd0   : > { %v602_v18 = vsel %vm601_vm0, %v2111_v17, -inf }
  0xd1   : > { %v556_v20 = vpop.f32.mrf.mxu0  ;;  %603 = vmax.xlane.f32.xlu1 %v602_v18 }
  0xd2   : > { %v557_v21 = vadd.f32 %v556_v20, %v501_v19 }
  0xd3   : > { %v802_v38 = vpop.permute.xlu0 %801 }
  0xd4   : > { %v581_v23 = vmul.f32 %v2098_v10, %v557_v21 }
  0xd6   : > { %v2117_v24 = vadd.f32 %v2102_v13, %v581_v23 }
  0xd7   : > { %v807_v25 = vpop.permute.xlu1 %806  ;;  %v827_v40 = vpop.permute.xlu2 %826 }
  0xd8   : > { %v605_v26 = vsel %vm601_vm0, %v2117_v24, -inf }
  0xd9   : > { %v559_v27 = vpop.f32.mrf.mxu0  ;;  %606 = vmax.xlane.f32.xlu0 %v605_v26 }
  0xda   : > { %v560_v28 = vadd.f32 %v559_v27, %v503_v3 }
  0xdb   : > { %v861_v47 = vpop.permute.xlu0 %860 }
  0xdc   : > { %v582_v30 = vmul.f32 %v2098_v10, %v560_v28  ;;  %v836_v15 = vmul.f32 %v807_v25, %v560_v28 }
  0xde   : > { %v2123_v32 = vadd.f32 %v2102_v13, %v582_v30 }
  0xdf   : > { %v822_v34 = vpop.permute.xlu1 %821  ;;  %v866_v49 = vpop.permute.xlu2 %865 }
  0xe0   : > { %v608_v33 = vsel %vm601_vm0, %v2123_v32, -inf }
  0xe1   : > { %v562_v35 = vpop.f32.mrf.mxu0  ;;  %609 = vmax.xlane.f32.xlu2 %v608_v33 }
  0xe2   : > { %v563_v36 = vadd.f32 %v562_v35, %v505_v7  ;;  %v834_v7 = vmul.f32 %v2100_v11, %v2104_v14 }
  0xe3   : > { %v876_v55 = vpop.permute.xlu0 %875 }
  0xe4   : > { %v583_v37 = vmul.f32 %v2098_v10, %v563_v36  ;;  %v837_v3 = vmul.f32 %v812_v22, %v563_v36  ;;  %v898_v20 = vadd.f32 %v861_v47, %v834_v7 }
  0xe6   : > { %v2129_v39 = vadd.f32 %v2102_v13, %v583_v37  ;;  %v901_v23 = vadd.f32 %v876_v55, %v837_v3 }
  0xe7   : > { %v832_v44 = vpop.permute.xlu1 %831  ;;  %v881_v59 = vpop.permute.xlu2 %880 }
  0xe8   : > { %v611_v41 = vsel %vm601_vm0, %v2129_v39, -inf  ;;  %v909_v33 = vsel %vm601_vm0, %v901_v23, -inf }
  0xe9   : > { %v565_v42 = vpop.f32.mrf.mxu0  ;;  %612 = vmax.xlane.f32.xlu1 %v611_v41 }
  0xea   : > { %v566_v43 = vadd.f32 %v565_v42, %v507_v2  ;;  %v835_v2 = vmul.f32 %v802_v38, %v557_v21 }
  0xeb   : > { %v891_v4 = vpop.permute.xlu0 %890 }
  0xec   : > { %v584_v45 = vmul.f32 %v2098_v10, %v566_v43  ;;  %v838_v63 = vmul.f32 %v817_v31, %v566_v43  ;;  %v899_v8 = vadd.f32 %v866_v49, %v835_v2 }
  0xee   : > { %v2135_v46 = vadd.f32 %v2102_v13, %v584_v45  ;;  %v902_v12 = vadd.f32 %v881_v59, %v838_v63 }
  0xef   : > { %v871_v53 = vpop.permute.xlu1 %870  ;;  %v896_v30 = vpop.permute.xlu2 %895 }
  0xf0   : > { %v614_v48 = vsel %vm601_vm0, %v2135_v46, -inf  ;;  %v900_v21 = vadd.f32 %v871_v53, %v836_v15  ;;  %v910_v11 = vsel %vm601_vm0, %v902_v12, -inf }
  0xf1   : > { %v568_v50 = vpop.f32.mrf.mxu0  ;;  %615 = vmax.xlane.f32.xlu2 %v614_v48 }
  0xf2   : > { %v569_v51 = vadd.f32 %v568_v50, %v509_v5 }
  0xf4   : > { %v585_v52 = vmul.f32 %v2098_v10, %v569_v51  ;;  %v839_v60 = vmul.f32 %v822_v34, %v569_v51  ;;  %v908_v34 = vsel %vm601_vm0, %v900_v21, -inf }
  0xf6   : > { %v2141_v54 = vadd.f32 %v2102_v13, %v585_v52 }
  0xf7   : > { %v886_v62 = vpop.permute.xlu1 %885 }
  0xf8   : > { %v617_v56 = vsel %vm601_vm0, %v2141_v54, -inf  ;;  %v903_v5 = vadd.f32 %v886_v62, %v839_v60 }
  0xf9   : > { %v571_v57 = vpop.f32.mrf.mxu0  ;;  %618 = vmax.xlane.f32.xlu0 %v617_v56 }
  0xfa   : > { %v572_v58 = vadd.f32 %v571_v57, %v511_v29  ;;  %v912_v22 = vsel %vm601_vm0, %v903_v5, -inf  ;;  %v907_v29 = vsel %vm601_vm0, %v899_v8, -inf }
  0xfb   : > { %v913_v28 = vmax.f32 %v907_v29, %v912_v22 }
  0xfc   : > { %v586_v61 = vmul.f32 %v2098_v10, %v572_v58  ;;  %v840_v0 = vmul.f32 %v827_v40, %v572_v58 }
  0xfe   : > { %v2147_v1 = vadd.f32 %v2102_v13, %v586_v61  ;;  %v904_v18 = vadd.f32 %v891_v4, %v840_v0 }
 0x100   : > { %v620_v6 = vsel %vm601_vm0, %v2147_v1, -inf  ;;  %v914_v14 = vsel %vm601_vm0, %v904_v18, -inf }
 0x101   : > { %v574_v9 = vpop.f32.mrf.mxu0  ;;  %621 = vmax.xlane.f32.xlu1 %v620_v6  ;;  %v915_v37 = vmax.f32 %v908_v34, %v914_v14 }
 0x102   : > { %v575_v19 = vadd.f32 %v574_v9, %v2108_v16  ;;  %v906_v16 = vsel %vm601_vm0, %v898_v20, -inf }
 0x103   : > { %v911_v36 = vmax.f32 %v906_v16, %v910_v11 }
 0x104   : > { %v587_v26 = vmul.f32 %v2098_v10, %v575_v19  ;;  %v841_v27 = vmul.f32 %v832_v44, %v575_v19 }
 0x105   : > { %v918_v40 = vmax.f32 %v911_v36, %v913_v28 }
 0x106   : > { %v905_v31 = vadd.f32 %v896_v30, %v841_v27  ;;  %v2160_v25 = vadd.f32 %v2102_v13, %v587_v26 }
 0x108   : > { %v916_v10 = vsel %vm601_vm0, %v905_v31, -inf  ;;  %v623_v35 = vsel %vm601_vm0, %v2160_v25, -inf }
 0x109   : > { %v917_v38 = vmax.f32 %v909_v33, %v916_v10  ;;  %624 = vmax.xlane.f32.xlu0 %v623_v35 }
 0x10b   : > { %v919_v41 = vmax.f32 %v915_v37, %v917_v38 }
 0x10d   : > { %v920_v13 = vmax.f32 %v918_v40, %v919_v41 }
 0x10f   : > { %v921_v42 = vrot.slane %v920_v13, 4 }
 0x111   : > { %v922_v43 = vmax.f32 %v920_v13, %v921_v42 }
 0x113   : > { %v923_v44 = vrot.slane %v922_v43, 2 }
 0x115   : > { %v924_v45 = vmax.f32 %v922_v43, %v923_v44 }
 0x117   : > { %v925_v47 = vrot.slane %v924_v45, 1 }
 0x119   : > { %v926_v48 = vmax.f32 %v924_v45, %v925_v47 }
 0x11b   : > { %v927_v49 = vsub.f32 %v898_v20, %v926_v48  ;;  %v928_v50 = vsub.f32 %v899_v8, %v926_v48  ;;  %v929_v51 = vsub.f32 %v900_v21, %v926_v48  ;;  %v930_v52 = vsub.f32 %v901_v23, %v926_v48 }
 0x11c   : > { %v931_v53 = vsub.f32 %v902_v12, %v926_v48  ;;  %v932_v58 = vsub.f32 %v903_v5, %v926_v48  ;;  %v933_v60 = vsub.f32 %v904_v18, %v926_v48  ;;  %v934_v62 = vsub.f32 %v905_v31, %v926_v48 }
 0x11d   : > { %v935_v55 = vmul.f32 1.442695, %v927_v49  ;;  %v937_v56 = vmul.f32 1.442695, %v928_v50  ;;  %v939_v57 = vmul.f32 1.442695, %v929_v51 }
 0x11e   : > { %v941_v59 = vmul.f32 1.442695, %v930_v52  ;;  %v943_v61 = vmul.f32 1.442695, %v931_v53  ;;  %v945_v63 = vmul.f32 1.442695, %v932_v58 }
 0x11f   : > { %1650 = vpow2.f32 %v935_v55  ;;  %v947_v0 = vmul.f32 1.442695, %v933_v60  ;;  %v949_v4 = vmul.f32 1.442695, %v934_v62 }
 0x120   : > { %1652 = vpow2.f32 %v937_v56 }
 0x121   : > { %1654 = vpow2.f32 %v939_v57 }
 0x122   : > { %1656 = vpow2.f32 %v941_v59 }
 0x123   : > { %1658 = vpow2.f32 %v943_v61 }
 0x124   : > { %1660 = vpow2.f32 %v945_v63 }
 0x125   : > { %v2168_v2 = vpop.eup %1650  ;;  %1662 = vpow2.f32 %v947_v0 }
 0x126   : > { %v2170_v3 = vpop.eup %1652  ;;  %v951_v5 = vsel %vm601_vm0, %v2168_v2, 0.0  ;;  %1664 = vpow2.f32 %v949_v4 }
 0x127   : > { %v2174_v6 = vpop.eup %1654  ;;  %v952_v7 = vsel %vm601_vm0, %v2170_v3, 0.0 }
 0x128   : > { %v2178_v8 = vpop.eup %1656  ;;  %v953_v9 = vadd.f32 %v952_v7, %v951_v5  ;;  %v954_v12 = vsel %vm601_vm0, %v2174_v6, 0.0 }
 0x129   : > { %v2182_v15 = vpop.eup %1658  ;;  %v956_v19 = vsel %vm601_vm0, %v2178_v8, 0.0 }
 0x12a   : > { %v955_v18 = vadd.f32 %v954_v12, %v953_v9  ;;  %v1661_v20 = vpop.eup %1660  ;;  %v958_v21 = vsel %vm601_vm0, %v2182_v15, 0.0 }
 0x12b   : > { %v1663_v22 = vpop.eup %1662  ;;  %v960_v27 = vsel %vm601_vm0, %v1661_v20, 0.0 }
 0x12c   : > { %v957_v23 = vadd.f32 %v956_v19, %v955_v18  ;;  %v1665_v29 = vpop.eup %1664  ;;  %v962_v11 = vsel %vm601_vm0, %v1663_v22, 0.0 }
 0x12d   : > { %v964_v31 = vsel %vm601_vm0, %v1665_v29, 0.0 }
 0x12e   : > { %v959_v26 = vadd.f32 %v958_v21, %v957_v23 }
 0x130   : > { %v961_v30 = vadd.f32 %v960_v27, %v959_v26 }
 0x132   : > { %v963_v14 = vadd.f32 %v962_v11, %v961_v30 }
 0x134   : > { %v965_v16 = vadd.f32 %v964_v31, %v963_v14 }
 0x136   : > { %v966_v28 = vrot.slane %v965_v16, 4 }
 0x138   : > { %v967_v33 = vadd.f32 %v966_v28, %v965_v16 }
 0x13a   : > { %v968_v34 = vrot.slane %v967_v33, 2 }
 0x13c   : > { %v969_v10 = vadd.f32 %v968_v34, %v967_v33 }
 0x13e   : > { %v970_v35 = vrot.slane %v969_v10, 1 }
 0x140   : > { %v971_v36 = vadd.f32 %v970_v35, %v969_v10 }
 0x142   : > { %1666 = vrcp.f32 %v971_v36  ;;  %v983_v44 = vand.u32 2147483648, %v971_v36  ;;  %v981_v48 = vand.u32 2147483647, %v971_v36  ;;  %vm977_vm2 = vweird.f32 %v971_v36 }
 0x144   : > { %v604_v37 = vpop.xlane.xlu1 %603  ;;  %v984_v52 = vor.u32 1.1754944e-38, %v983_v44  ;;  %vm982_vm4 = vcmp.eq.f32.partialorder %v981_v48, 8.507059e+37 }
 0x145   : > { %v626_v38 = vsub.f32 %v2111_v17, %v604_v37 }
 0x147   : > { %v634_v40 = vmul.f32 1.442695, %v626_v38 }
 0x148   : > { %v1667_v41 = vpop.eup %1666 }
 0x149   : > { %1668 = vpow2.f32 %v634_v40  ;;  %v973_v13 = vmul.f32 %v1667_v41, %v971_v36  ;;  %vm978_vm1 = vweird.f32 %v1667_v41 }
 0x14a   : > { %vm979_vm3 = vmor %vm977_vm2, %vm978_vm1 }
 0x14b   : > { %v974_v42 = vsub.f32 1.0, %v973_v13 }
 0x14c   : > { %v607_v43 = vpop.xlane.xlu0 %606 }
 0x14d   : > { %v627_v45 = vsub.f32 %v2117_v24, %v607_v43  ;;  %v975_v47 = vmul.f32 %v1667_v41, %v974_v42 }
 0x14f   : > { %v2193_v49 = vpop.eup %1668  ;;  %v636_v50 = vmul.f32 1.442695, %v627_v45  ;;  %v976_v51 = vadd.f32 %v1667_v41, %v975_v47 }
 0x150   : > { %v650_v17 = vsel %vm601_vm0, %v2193_v49, 0.0 }
 0x151   : > { %1670 = vpow2.f32 %v636_v50  ;;  %651 = vadd.xlane.f32.xlu2 %v650_v17  ;;  %v980_v53 = vsel %vm979_vm3, %v1667_v41, %v976_v51 }
 0x152   : > { %v985_v55 = vsel %vm982_vm4, %v984_v52, %v980_v53 }
 0x153   : > { %v993_v56 = vmul.f32 %v1665_v29, %v985_v55  ;;  %v992_v60 = vmul.f32 %v1663_v22, %v985_v55  ;;  %v991_v62 = vmul.f32 %v1661_v20, %v985_v55  ;;  %v990_v5 = vmul.f32 %v2182_v15, %v985_v55 }
 0x154   : > { %v610_v24 = vpop.xlane.xlu2 %609  ;;  %v989_v9 = vmul.f32 %v2178_v8, %v985_v55  ;;  %v988_v20 = vmul.f32 %v2174_v6, %v985_v55  ;;  %v987_v23 = vmul.f32 %v2170_v3, %v985_v55  ;;  %v986_v26 = vmul.f32 %v2168_v2, %v985_v55 }
 0x155   : > { %v628_v57 = vsub.f32 %v2123_v32, %v610_v24  ;;  %1530 = vmatpush.xpose.msk.msra.mxu2 %vm601_vm0, %v993_v56 }
 0x157   : > { %v2199_v58 = vpop.eup %1670  ;;  %v638_v59 = vmul.f32 1.442695, %v628_v57 }
 0x158   : > { %v653_v61 = vsel %vm601_vm0, %v2199_v58, 0.0 }
 0x159   : > { %1672 = vpow2.f32 %v638_v59  ;;  %1531 = vmatpush.xpose.msk.msra.mxu2 %vm601_vm0, %v992_v60  ;;  %654 = vadd.xlane.f32.xlu1 %v653_v61 }
 0x15c   : > { %v613_v63 = vpop.xlane.xlu1 %612 }
 0x15d   : > { %v629_v0 = vsub.f32 %v2129_v39, %v613_v63  ;;  %1532 = vmatpush.xpose.msk.msra.mxu2 %vm601_vm0, %v991_v62 }
 0x15f   : > { %v2206_v32 = vpop.eup %1672  ;;  %v640_v4 = vmul.f32 1.442695, %v629_v0 }
 0x160   : > { %v656_v7 = vsel %vm601_vm0, %v2206_v32, 0.0 }
 0x161   : > { %1674 = vpow2.f32 %v640_v4  ;;  %1533 = vmatpush.xpose.msk.msra.mxu2 %vm601_vm0, %v990_v5  ;;  %657 = vadd.xlane.f32.xlu2 %v656_v7 }
 0x164   : > { %v616_v12 = vpop.xlane.xlu2 %615 }
 0x165   : > { %v630_v18 = vsub.f32 %v2135_v46, %v616_v12  ;;  %1534 = vmatpush.xpose.msk.msra.mxu2 %vm601_vm0, %v989_v9 }
 0x167   : > { %v2215_v39 = vpop.eup %1674  ;;  %v642_v19 = vmul.f32 1.442695, %v630_v18 }
 0x168   : > { %v659_v15 = vsel %vm601_vm0, %v2215_v39, 0.0 }
 0x169   : > { %1676 = vpow2.f32 %v642_v19  ;;  %1535 = vmatpush.xpose.msk.msra.mxu2 %vm601_vm0, %v988_v20  ;;  %660 = vadd.xlane.f32.xlu0 %v659_v15 }
 0x16c   : > { %v619_v8 = vpop.xlane.xlu0 %618 }
 0x16d   : > { %1536 = vmatpush.xpose.msk.msra.mxu2 %vm601_vm0, %v987_v23  ;;  %v631_v46 = vsub.f32 %v2141_v54, %v619_v8 }
 0x16f   : > { %v2224_v21 = vpop.eup %1676  ;;  %v644_v22 = vmul.f32 1.442695, %v631_v46 }
 0x170   : > { %v662_v6 = vsel %vm601_vm0, %v2224_v21, 0.0 }
 0x171   : > { %1678 = vpow2.f32 %v644_v22  ;;  %1537 = vmatpush.xpose.msk.msra.mxu2 %vm601_vm0, %v986_v26  ;;  %663 = vadd.xlane.f32.xlu1 %v662_v6 }
 0x174   : > { %v622_v27 = vpop.xlane.xlu1 %621 }
 0x175   : > { %v632_v3 = vsub.f32 %v2147_v1, %v622_v27 }
 0x177   : > { %v2231_v29 = vpop.eup %1678  ;;  %v646_v30 = vmul.f32 1.442695, %v632_v3 }
 0x178   : > { %v665_v54 = vsel %vm601_vm0, %v2231_v29, 0.0 }
 0x179   : > { %1680 = vpow2.f32 %v646_v30  ;;  %666 = vadd.xlane.f32.xlu2 %v665_v54 }
 0x17c   : > { %v625_v11 = vpop.xlane.xlu0 %624 }
 0x17d   : > { %v633_v2 = vsub.f32 %v2160_v25, %v625_v11 }
 0x17f   : > { %v2236_v14 = vpop.eup %1680  ;;  %v648_v31 = vmul.f32 1.442695, %v633_v2 }
 0x180   : > { %v668_v16 = vsel %vm601_vm0, %v2236_v14, 0.0 }
 0x181   : > { %1682 = vpow2.f32 %v648_v31  ;;  %669 = vadd.xlane.f32.xlu0 %v668_v16  ;;  %v470_v31 = vld [vmem:[#allocation5 + $0x178] sm:$0xff]  ;;  %v469_v16 = vld [vmem:[#allocation5 + $0x170] sm:$0xff] }
 0x182   : > { %1288 = vmatpush.msrb.mxu0 %v470_v31  ;;  %v453_v31 = vld [vmem:[#allocation5 + $0xf0] sm:$0xff] }
 0x184   : > { %1289 = vmatpush.msrb.mxu0 %v469_v16  ;;  %v452_v16 = vld [vmem:[#allocation5 + $0xe8] sm:$0xff] }
 0x187   : > { %v2240_v1 = vpop.eup %1682 }
 0x188   : > { %v671_v28 = vsel %vm601_vm0, %v2240_v1, 0.0 }
 0x189   : > { %672 = vadd.xlane.f32.xlu1 %v671_v28 }
 0x1c4   : > { %v652_v33 = vpop.xlane.xlu2 %651 }
 0x1c5   : > { %1684 = vrcp.f32 %v652_v33  ;;  %v685_v36 = vand.u32 2147483648, %v652_v33  ;;  %v683_v38 = vand.u32 2147483647, %v652_v33  ;;  %vm679_vm6 = vweird.f32 %v652_v33 }
 0x1c7   : > { %v686_v13 = vor.u32 1.1754944e-38, %v685_v36  ;;  %vm684_vm8 = vcmp.eq.f32.partialorder %v683_v38, 8.507059e+37  ;;  %v467_v36 = vld [vmem:[#allocation5 + $0x160] sm:$0xff] }
 0x1cb   : > { %v1685_v34 = vpop.eup %1684 }
 0x1cc   : > { %v675_v10 = vmul.f32 %v1685_v34, %v652_v33  ;;  %v655_v35 = vpop.xlane.xlu1 %654  ;;  %vm680_vm5 = vweird.f32 %v1685_v34 }
 0x1cd   : > { %1686 = vrcp.f32 %v655_v35  ;;  %vm681_vm7 = vmor %vm679_vm6, %vm680_vm5  ;;  %v700_v50 = vand.u32 2147483648, %v655_v35  ;;  %v698_v17 = vand.u32 2147483647, %v655_v35  ;;  %vm694_vm10 = vweird.f32 %v655_v35 }
 0x1ce   : > { %v676_v25 = vsub.f32 1.0, %v675_v10 }
 0x1cf   : > { %v701_v55 = vor.u32 1.1754944e-38, %v700_v50  ;;  %vm699_vm12 = vcmp.eq.f32.partialorder %v698_v17, 8.507059e+37 }
 0x1d0   : > { %v677_v37 = vmul.f32 %v1685_v34, %v676_v25 }
 0x1d2   : > { %v678_v40 = vadd.f32 %v1685_v34, %v677_v37 }
 0x1d3   : > { %v1687_v41 = vpop.eup %1686 }
 0x1d4   : > { %v690_v42 = vmul.f32 %v1687_v41, %v655_v35  ;;  %v658_v43 = vpop.xlane.xlu2 %657  ;;  %v682_v44 = vsel %vm681_vm7, %v1685_v34, %v678_v40  ;;  %vm695_vm9 = vweird.f32 %v1687_v41  ;;  %v468_v34 = vld [vmem:[#allocation5 + $0x168] sm:$0xff] }
 0x1d5   : > { %1688 = vrcp.f32 %v658_v43  ;;  %v687_v45 = vsel %vm684_vm8, %v686_v13, %v682_v44  ;;  %vm696_vm11 = vmor %vm694_vm10, %vm695_vm9  ;;  %v715_v61 = vand.u32 2147483648, %v658_v43  ;;  %v713_v63 = vand.u32 2147483647, %v658_v43  ;;  %1290 = vmatpush.msrb.mxu0 %v468_v34  ;;  %v465_v44 = vld [vmem:[#allocation5 + $0x150] sm:$0xff]  ;;  %v451_v34 = vld [vmem:[#allocation5 + $0xe0] sm:$0xff] }
 0x1d6   : > { %v691_v47 = vsub.f32 1.0, %v690_v42  ;;  %v688_v48 = vmul.f32 %v2193_v49, %v687_v45  ;;  %vm709_vm14 = vweird.f32 %v658_v43 }
 0x1d7   : > { %v716_v5 = vor.u32 1.1754944e-38, %v715_v61  ;;  %vm714_vm1 = vcmp.eq.f32.partialorder %v713_v63, 8.507059e+37  ;;  %1291 = vmatpush.msrb.mxu0 %v467_v36  ;;  %v450_v36 = vld [vmem:[#allocation5 + $0xd8] sm:$0xff] }
 0x1d8   : > { %v692_v51 = vmul.f32 %v1687_v41, %v691_v47  ;;  %1522 = vmatmul.msk.f32.vlgmr.msra.gmra.mxu1 %vm601_vm0, %v688_v48  ;;  %1538 = vmatmul.msk.f32.vlgmr.msra.gmra.mxu2 %vm601_vm0, %v688_v48  ;;  %v464_v48 = vld [vmem:[#allocation5 + $0x148] sm:$0xff] }
 0x1da   : > { %v693_v52 = vadd.f32 %v1687_v41, %v692_v51 }
 0x1db   : > { %v1689_v53 = vpop.eup %1688 }
 0x1dc   : > { %v705_v56 = vmul.f32 %v1689_v53, %v658_v43  ;;  %v661_v24 = vpop.xlane.xlu0 %660  ;;  %v697_v57 = vsel %vm696_vm11, %v1687_v41, %v693_v52  ;;  %vm710_vm13 = vweird.f32 %v1689_v53  ;;  %v466_v41 = vld [vmem:[#allocation5 + $0x158] sm:$0xff]  ;;  %v463_v52 = vld [vmem:[#allocation5 + $0x140] sm:$0xff] }
 0x1dd   : > { %1690 = vrcp.f32 %v661_v24  ;;  %v702_v59 = vsel %vm699_vm12, %v701_v55, %v697_v57  ;;  %vm711_vm15 = vmor %vm709_vm14, %vm710_vm13  ;;  %v730_v15 = vand.u32 2147483648, %v661_v24  ;;  %v728_v23 = vand.u32 2147483647, %v661_v24  ;;  %1292 = vmatpush.msrb.mxu0 %v466_v41  ;;  %v462_v57 = vld [vmem:[#allocation5 + $0x138] sm:$0xff]  ;;  %v448_v41 = vld [vmem:[#allocation5 + $0xc8] sm:$0xff] }
 0x1de   : > { %v706_v49 = vsub.f32 1.0, %v705_v56  ;;  %v703_v60 = vmul.f32 %v2199_v58, %v702_v59  ;;  %vm724_vm3 = vweird.f32 %v661_v24 }
 0x1df   : > { %v731_v22 = vor.u32 1.1754944e-38, %v730_v15  ;;  %vm729_vm5 = vcmp.eq.f32.partialorder %v728_v23, 8.507059e+37  ;;  %1293 = vmatpush.msrb.mxu0 %v465_v44  ;;  %v457_v15 = vld [vmem:[#allocation5 + $0x110] sm:$0xff] }
 0x1e0   : > { %v707_v62 = vmul.f32 %v1689_v53, %v706_v49  ;;  %1523 = vmatmul.msk.f32.gmra.mxu1 %vm601_vm0, %v703_v60  ;;  %1539 = vmatmul.msk.f32.gmra.mxu2 %vm601_vm0, %v703_v60  ;;  %v461_v60 = vld [vmem:[#allocation5 + $0x130] sm:$0xff] }
 0x1e1   : > { %1294 = vmatpush.msrb.mxu0 %v464_v48  ;;  %v432_v48 = vld [vmem:[#allocation5 + $0x48] sm:$0xff] }
 0x1e2   : > { %v708_v0 = vadd.f32 %v1689_v53, %v707_v62 }
 0x1e3   : > { %v1691_v4 = vpop.eup %1690  ;;  %1295 = vmatpush.msrb.mxu0 %v463_v52  ;;  %v444_v52 = vld [vmem:[#allocation5 + $0xa8] sm:$0xff] }
 0x1e4   : > { %v720_v7 = vmul.f32 %v1691_v4, %v661_v24  ;;  %v664_v9 = vpop.xlane.xlu1 %663  ;;  %v712_v12 = vsel %vm711_vm15, %v1689_v53, %v708_v0  ;;  %vm725_vm2 = vweird.f32 %v1691_v4  ;;  %v460_v0 = vld [vmem:[#allocation5 + $0x128] sm:$0xff] }
 0x1e5   : > { %1692 = vrcp.f32 %v664_v9  ;;  %v717_v18 = vsel %vm714_vm1, %v716_v5, %v712_v12  ;;  %vm726_vm4 = vmor %vm724_vm3, %vm725_vm2  ;;  %v745_v11 = vand.u32 2147483648, %v664_v9  ;;  %v743_v2 = vand.u32 2147483647, %v664_v9  ;;  %1296 = vmatpush.msrb.mxu0 %v462_v57  ;;  %v442_v57 = vld [vmem:[#allocation5 + $0x98] sm:$0xff] }
 0x1e6   : > { %v721_v58 = vsub.f32 1.0, %v720_v7  ;;  %v718_v19 = vmul.f32 %v2206_v32, %v717_v18  ;;  %vm739_vm7 = vweird.f32 %v664_v9  ;;  %v459_v7 = vld [vmem:[#allocation5 + $0x120] sm:$0xff] }
 0x1e7   : > { %v746_v10 = vor.u32 1.1754944e-38, %v745_v11  ;;  %vm744_vm9 = vcmp.eq.f32.partialorder %v743_v2, 8.507059e+37  ;;  %1297 = vmatpush.msrb.mxu0 %v461_v60  ;;  %v454_v2 = vld [vmem:[#allocation5 + $0xf8] sm:$0xff]  ;;  %v2303_v60 = vld [vmem:[%s2014_s24 + $0x20] sm:$0xff] }
 0x1e8   : > { %v722_v20 = vmul.f32 %v1691_v4, %v721_v58  ;;  %1524 = vmatmul.msk.f32.gmra.mxu1 %vm601_vm0, %v718_v19  ;;  %1540 = vmatmul.msk.f32.gmra.mxu2 %vm601_vm0, %v718_v19  ;;  %v458_v58 = vld [vmem:[#allocation5 + $0x118] sm:$0xff] }
 0x1e9   : > { %1298 = vmatpush.msrb.mxu0 %v460_v0  ;;  %1247 = vmatpush.msrb.mxu3 %v454_v2  ;;  %v440_v0 = vld [vmem:[#allocation5 + $0x88] sm:$0xff]  ;;  %v483_v2 = vld [vmem:[#allocation5 + $0x1e0] sm:$0xff] }
 0x1ea   : > { %v723_v8 = vadd.f32 %v1691_v4, %v722_v20 }
 0x1eb   : > { %v1693_v46 = vpop.eup %1692  ;;  %1299 = vmatpush.msrb.mxu0 %v459_v7  ;;  %1248 = vmatpush.msrb.mxu3 %v453_v31  ;;  %v425_v7 = vld [vmem:[#allocation5 + $0x10] sm:$0xff]  ;;  %v482_v31 = vld [vmem:[#allocation5 + $0x1d8] sm:$0xff] }
 0x1ec   : > { %v735_v26 = vmul.f32 %v1693_v46, %v664_v9  ;;  %v667_v6 = vpop.xlane.xlu2 %666  ;;  %v727_v27 = vsel %vm726_vm4, %v1691_v4, %v723_v8  ;;  %vm740_vm6 = vweird.f32 %v1693_v46 }
 0x1ed   : > { %1694 = vrcp.f32 %v667_v6  ;;  %v732_v32 = vsel %vm729_vm5, %v731_v22, %v727_v27  ;;  %vm741_vm8 = vmor %vm739_vm7, %vm740_vm6  ;;  %v760_v42 = vand.u32 2147483648, %v667_v6  ;;  %v758_v43 = vand.u32 2147483647, %v667_v6  ;;  %1300 = vmatpush.msrb.mxu0 %v458_v58  ;;  %1249 = vmatpush.msrb.mxu3 %v452_v16  ;;  %v481_v16 = vld [vmem:[#allocation5 + $0x1d0] sm:$0xff] }
 0x1ee   : > { %v736_v3 = vsub.f32 1.0, %v735_v26  ;;  %v733_v30 = vmul.f32 %v2215_v39, %v732_v32  ;;  %vm754_vm11 = vweird.f32 %v667_v6  ;;  %v456_v26 = vld [vmem:[#allocation5 + $0x108] sm:$0xff]  ;;  %vm1124_vm7 = vcmask 523264  }
 0x1ef   : > { %v761_v50 = vor.u32 1.1754944e-38, %v760_v42  ;;  %vm759_vm13 = vcmp.eq.f32.partialorder %v758_v43, 8.507059e+37  ;;  %1301 = vmatpush.msrb.mxu0 %v457_v15  ;;  %1250 = vmatpush.msrb.mxu3 %v451_v34  ;;  %v434_v42 = vld [vmem:[#allocation5 + $0x58] sm:$0xff]  ;;  %v447_v43 = vld [vmem:[#allocation5 + $0xc0] sm:$0xff] }
 0x1f0   : > { %v737_v54 = vmul.f32 %v1693_v46, %v736_v3  ;;  %1525 = vmatmul.msk.f32.gmra.mxu1 %vm601_vm0, %v733_v30  ;;  %1541 = vmatmul.msk.f32.gmra.mxu2 %vm601_vm0, %v733_v30  ;;  %v2271_v3 = vld [vmem:[%s2014_s24] sm:$0xff]  ;;  %v486_v15 = vld [vmem:[#allocation5 + $0x1f8] sm:$0xff] }
 0x1f1   : > { %1302 = vmatpush.msrb.mxu0 %v456_v26  ;;  %1251 = vmatpush.msrb.mxu3 %v450_v36  ;;  %v484_v26 = vld [vmem:[#allocation5 + $0x1e8] sm:$0xff]  ;;  %v478_v34 = vld [vmem:[#allocation5 + $0x1b8] sm:$0xff] }
 0x1f2   : > { %v738_v28 = vadd.f32 %v1693_v46, %v737_v54  ;;  %v2279_v54 = vld [vmem:[%s2014_s24 + $0x8] sm:$0xff]  ;;  %1562 = vmatpush.msrb.mxu2 %v486_v15 }
 0x1f3   : > { %v1695_v33 = vpop.eup %1694  ;;  %v472_v36 = vld [vmem:[#allocation5 + $0x188] sm:$0xff] }
 0x1f4   : > { %v750_v35 = vmul.f32 %v1695_v33, %v667_v6  ;;  %v670_v25 = vpop.xlane.xlu0 %669  ;;  %v742_v39 = vsel %vm741_vm8, %v1693_v46, %v738_v28  ;;  %vm755_vm10 = vweird.f32 %v1695_v33  ;;  %v455_v6 = vld [vmem:[#allocation5 + $0x100] sm:$0xff] }
 0x1f5   : > { %1696 = vrcp.f32 %v670_v25  ;;  %v747_v38 = vsel %vm744_vm9, %v746_v10, %v742_v39  ;;  %vm756_vm12 = vmor %vm754_vm11, %vm755_vm10  ;;  %v775_v56 = vand.u32 2147483648, %v670_v25  ;;  %v773_v49 = vand.u32 2147483647, %v670_v25  ;;  %1303 = vmatpush.msrb.mxu0 %v455_v6  ;;  %v437_v39 = vld [vmem:[#allocation5 + $0x70] sm:$0xff] }
 0x1f6   : > { %v751_v37 = vsub.f32 1.0, %v750_v35  ;;  %v748_v40 = vmul.f32 %v2224_v21, %v747_v38  ;;  %vm769_vm15 = vweird.f32 %v670_v25  ;;  %v2287_v35 = vld [vmem:[%s2014_s24 + $0x10] sm:$0xff] }
 0x1f7   : > { %v776_v63 = vor.u32 1.1754944e-38, %v775_v56  ;;  %vm774_vm2 = vcmp.eq.f32.partialorder %v773_v49, 8.507059e+37  ;;  %v449_v38 = vld [vmem:[#allocation5 + $0xd0] sm:$0xff]  ;;  %v443_v56 = vld [vmem:[#allocation5 + $0xa0] sm:$0xff]  ;;  %v428_v49 = vld [vmem:[#allocation5 + $0x28] sm:$0xff] }
 0x1f8   : > { %v752_v13 = vmul.f32 %v1695_v33, %v751_v37  ;;  %1526 = vmatmul.msk.f32.gmra.mxu1 %vm601_vm0, %v748_v40  ;;  %1542 = vmatmul.msk.f32.gmra.mxu2 %vm601_vm0, %v748_v40  ;;  %v436_v37 = vld [vmem:[#allocation5 + $0x68] sm:$0xff]  ;;  %v435_v40 = vld [vmem:[#allocation5 + $0x60] sm:$0xff] }
 0x1f9   : > { %1252 = vmatpush.msrb.mxu3 %v449_v38 }
 0x1fa   : > { %v753_v45 = vadd.f32 %v1695_v33, %v752_v13 }
 0x1fb   : > { %v1697_v47 = vpop.eup %1696  ;;  %1253 = vmatpush.msrb.mxu3 %v448_v41 }
 0x1fc   : > { %v765_v51 = vmul.f32 %v1697_v47, %v670_v25  ;;  %v673_v21 = vpop.xlane.xlu1 %672  ;;  %v757_v17 = vsel %vm756_vm12, %v1695_v33, %v753_v45  ;;  %vm770_vm14 = vweird.f32 %v1697_v47  ;;  %v438_v33 = vld [vmem:[#allocation5 + $0x78] sm:$0xff]  ;;  %v433_v45 = vld [vmem:[#allocation5 + $0x50] sm:$0xff] }
 0x1fd   : > { %1698 = vrcp.f32 %v673_v21  ;;  %v762_v55 = vsel %vm759_vm13, %v761_v50, %v757_v17  ;;  %vm771_vm1 = vmor %vm769_vm15, %vm770_vm14  ;;  %v790_v18 = vand.u32 2147483648, %v673_v21  ;;  %v788_v20 = vand.u32 2147483647, %v673_v21  ;;  %1206 = vmatpush.msrb.mxu1 %v438_v33  ;;  %1254 = vmatpush.msrb.mxu3 %v447_v43  ;;  %v2295_v50 = vld [vmem:[%s2014_s24 + $0x18] sm:$0xff]  ;;  %v431_v17 = vld [vmem:[#allocation5 + $0x40] sm:$0xff] }
 0x1fe   : > { %v766_v53 = vsub.f32 1.0, %v765_v51  ;;  %v763_v24 = vmul.f32 %v2231_v29, %v762_v55  ;;  %vm784_vm4 = vweird.f32 %v673_v21  ;;  %v430_v55 = vld [vmem:[#allocation5 + $0x38] sm:$0xff]  ;;  %v479_v33 = vld [vmem:[#allocation5 + $0x1c0] sm:$0xff] }
 0x1ff   : > { %v791_v8 = vor.u32 1.1754944e-38, %v790_v18  ;;  %vm789_vm6 = vcmp.eq.f32.partialorder %v788_v20, 8.507059e+37  ;;  %1207 = vmatpush.msrb.mxu1 %v437_v39  ;;  %v2311_v18 = vld [vmem:[%s2014_s24 + $0x28] sm:$0xff]  ;;  %v474_v39 = vld [vmem:[#allocation5 + $0x198] sm:$0xff] }
 0x200   : > { %v767_v59 = vmul.f32 %v1697_v47, %v766_v53  ;;  %1527 = vmatmul.msk.f32.gmra.mxu1 %vm601_vm0, %v763_v24  ;;  %1543 = vmatmul.msk.f32.gmra.mxu2 %vm601_vm0, %v763_v24  ;;  %v429_v24 = vld [vmem:[#allocation5 + $0x30] sm:$0xff] }
 0x201   : > { %1208 = vmatpush.msrb.mxu1 %v436_v37  ;;  %v471_v37 = vld [vmem:[#allocation5 + $0x180] sm:$0xff] }
 0x202   : > { %v768_v61 = vadd.f32 %v1697_v47, %v767_v59 }
 0x203   : > { %v1699_v62 = vpop.eup %1698  ;;  %1209 = vmatpush.msrb.mxu1 %v435_v40 }
 0x204   : > { %v780_v4 = vmul.f32 %v1699_v62, %v673_v21  ;;  %v772_v29 = vsel %vm771_vm1, %v1697_v47, %v768_v61  ;;  %vm785_vm3 = vweird.f32 %v1699_v62  ;;  %v446_v47 = vld [vmem:[#allocation5 + $0xb8] sm:$0xff]  ;;  %v445_v21 = vld [vmem:[#allocation5 + $0xb0] sm:$0xff] }
 0x205   : > { %v777_v5 = vsel %vm774_vm2, %v776_v63, %v772_v29  ;;  %vm786_vm5 = vmor %vm784_vm4, %vm785_vm3  ;;  %1210 = vmatpush.msrb.mxu1 %v434_v42  ;;  %1255 = vmatpush.msrb.mxu3 %v446_v47  ;;  %v427_v63 = vld [vmem:[#allocation5 + $0x20] sm:$0xff] }
 0x206   : > { %v781_v9 = vsub.f32 1.0, %v780_v4  ;;  %v778_v12 = vmul.f32 %v2236_v14, %v777_v5  ;;  %v426_v4 = vld [vmem:[#allocation5 + $0x18] sm:$0xff]  ;;  %v439_v29 = vld [vmem:[#allocation5 + $0x80] sm:$0xff] }
 0x207   : > { %1211 = vmatpush.msrb.mxu1 %v433_v45  ;;  %1256 = vmatpush.msrb.mxu3 %v445_v21 }
 0x208   : > { %v782_v19 = vmul.f32 %v1699_v62, %v781_v9  ;;  %1528 = vmatmul.msk.f32.gmra.mxu1 %vm601_vm0, %v778_v12  ;;  %1544 = vmatmul.msk.f32.gmra.mxu2 %vm601_vm0, %v778_v12  ;;  %v424_v12 = vld [vmem:[#allocation5 + $0x8] sm:$0xff] }
 0x209   : > { %1212 = vmatpush.msrb.mxu1 %v432_v48  ;;  %1257 = vmatpush.msrb.mxu3 %v444_v52 }
 0x20a   : > { %v783_v23 = vadd.f32 %v1699_v62, %v782_v19  ;;  %v423_v19 = vld [vmem:[#allocation5] sm:$0xff] }
 0x20b   : > { %1213 = vmatpush.msrb.mxu1 %v431_v17  ;;  %1258 = vmatpush.msrb.mxu3 %v443_v56 }
 0x20c   : > { %v787_v14 = vsel %vm786_vm5, %v1699_v62, %v783_v23  ;;  %v441_v62 = vld [vmem:[#allocation5 + $0x90] sm:$0xff] }
 0x20d   : > { %v792_v46 = vsel %vm789_vm6, %v791_v8, %v787_v14  ;;  %1214 = vmatpush.msrb.mxu1 %v430_v55  ;;  %1259 = vmatpush.msrb.mxu3 %v442_v57  ;;  %v2320_v8 = vld [vmem:[%s2014_s24 + $0x30] sm:$0xff] }
 0x20e   : > { %v793_v22 = vmul.f32 %v2240_v1, %v792_v46 }
 0x20f   : > { %1215 = vmatpush.msrb.mxu1 %v429_v24  ;;  %1260 = vmatpush.msrb.mxu3 %v441_v62 }
 0x210   : > { %1529 = vmatmul.msk.f32.gmra.mxu1 %vm601_vm0, %v793_v22  ;;  %1545 = vmatmul.msk.f32.gmra.mxu2 %vm601_vm0, %v793_v22  ;;  %v485_v22 = vld [vmem:[#allocation5 + $0x1f0] sm:$0xff] }
 0x211   : > { %1216 = vmatpush.msrb.mxu1 %v428_v49  ;;  %1261 = vmatpush.msrb.mxu3 %v440_v0 }
 0x212   : > { %1563 = vmatpush.msrb.mxu2 %v485_v22 }
 0x213   : > { %1217 = vmatpush.msrb.mxu1 %v427_v63  ;;  %1262 = vmatpush.msrb.mxu3 %v439_v29 }
 0x214   : > { %1564 = vmatpush.msrb.mxu2 %v484_v26 }
 0x215   : > { %1218 = vmatpush.msrb.mxu1 %v426_v4 }
 0x216   : > { %1565 = vmatpush.msrb.mxu2 %v483_v2 }
 0x217   : > { %1219 = vmatpush.msrb.mxu1 %v425_v7 }
 0x218   : > { %1566 = vmatpush.msrb.mxu2 %v482_v31 }
 0x219   : > { %1220 = vmatpush.msrb.mxu1 %v424_v12 }
 0x21a   : > { %1567 = vmatpush.msrb.mxu2 %v481_v16 }
 0x21b   : > { %1221 = vmatpush.msrb.mxu1 %v423_v19 }
 0x21c   : > { %1222 = vmatmul.f32.vlgmr.msrb.gmra.mxu1 %v2271_v3 }
 0x21d   : > { %1329 = vmatpush.msra.mxu1 %v486_v15 }
 0x21f   : > { %1330 = vmatpush.msra.mxu1 %v485_v22 }
 0x221   : > { %1331 = vmatpush.msra.mxu1 %v484_v26 }
 0x223   : > { %1332 = vmatpush.msra.mxu1 %v483_v2 }
 0x224   : > { %1225 = vmatmul.f32.gmra.mxu1 %v2279_v54 }
 0x225   : > { %1333 = vmatpush.msra.mxu1 %v482_v31 }
 0x227   : > { %1334 = vmatpush.msra.mxu1 %v481_v16 }
 0x22c   : > { %1228 = vmatmul.f32.gmra.mxu1 %v2287_v35 }
 0x234   : > { %1231 = vmatmul.f32.gmra.mxu1 %v2295_v50 }
 0x23c   : > { %1234 = vmatmul.f32.gmra.mxu1 %v2303_v60 }
 0x244   : > { %1237 = vmatmul.f32.gmra.mxu1 %v2311_v18 }
 0x24c   : > { %1240 = vmatmul.f32.gmra.mxu1 %v2320_v8 }
 0x255   : > { %v2268_v27 = vpop.f32.mrf.mxu1 }
 0x256   : > { %v1190_v32 = vmul.f32 %v2271_v3, %v2268_v27 }
 0x258   : > { %1304 = vmatmul.f32.vlgmr.msrb.gmra.mxu0 %v1190_v32  ;;  %v2327_v32 = vld [vmem:[%s2014_s24 + $0x38] sm:$0xff] }
 0x259   : > { %1243 = vmatmul.f32.gmra.mxu1 %v2327_v32 }
 0x25b   : > { %v1100_v30 = vpop.f32.mrf.mxu2 }
 0x25c   : > { %1546 = vmatmul.msk.f32.vlgmr.msra.gmra.mxu3 %vm1124_vm7, %v1100_v30 }
 0x25d   : > { %v2276_v1 = vpop.f32.mrf.mxu1 }
 0x25e   : > { %v1191_v11 = vmul.f32 %v2279_v54, %v2276_v1 }
 0x260   : > { %1307 = vmatmul.f32.gmra.mxu0 %v1191_v11 }
 0x263   : > { %v1103_v28 = vpop.f32.mrf.mxu2 }
 0x264   : > { %1547 = vmatmul.msk.f32.gmra.mxu3 %vm1124_vm7, %v1103_v28  ;;  %v480_v28 = vld [vmem:[#allocation5 + $0x1c8] sm:$0xff] }
 0x265   : > { %v2284_v10 = vpop.f32.mrf.mxu1  ;;  %1568 = vmatpush.msrb.mxu2 %v480_v28  ;;  %1335 = vmatpush.msra.mxu1 %v480_v28 }
 0x266   : > { %v1192_v25 = vmul.f32 %v2287_v35, %v2284_v10 }
 0x267   : > { %1569 = vmatpush.msrb.mxu2 %v479_v33  ;;  %1336 = vmatpush.msra.mxu1 %v479_v33 }
 0x268   : > { %1310 = vmatmul.f32.gmra.mxu0 %v1192_v25  ;;  %v476_v25 = vld [vmem:[#allocation5 + $0x1a8] sm:$0xff] }
 0x269   : > { %1570 = vmatpush.msrb.mxu2 %v478_v34  ;;  %1337 = vmatpush.msra.mxu1 %v478_v34 }
 0x26b   : > { %v1106_v13 = vpop.f32.mrf.mxu2 }
 0x26c   : > { %1548 = vmatmul.msk.f32.gmra.mxu3 %vm1124_vm7, %v1106_v13 }
 0x26d   : > { %v2292_v44 = vpop.f32.mrf.mxu1 }
 0x26e   : > { %v1193_v51 = vmul.f32 %v2295_v50, %v2292_v44 }
 0x270   : > { %1313 = vmatmul.f32.gmra.mxu0 %v1193_v51 }
 0x273   : > { %v1109_v53 = vpop.f32.mrf.mxu2 }
 0x274   : > { %1549 = vmatmul.msk.f32.gmra.mxu3 %vm1124_vm7, %v1109_v53 }
 0x275   : > { %v2300_v59 = vpop.f32.mrf.mxu1 }
 0x276   : > { %v1194_v61 = vmul.f32 %v2303_v60, %v2300_v59 }
 0x278   : > { %1316 = vmatmul.f32.gmra.mxu0 %v1194_v61 }
 0x27b   : > { %v1112_v5 = vpop.f32.mrf.mxu2 }
 0x27c   : > { %1550 = vmatmul.msk.f32.gmra.mxu3 %vm1124_vm7, %v1112_v5 }
 0x27d   : > { %v2308_v9 = vpop.f32.mrf.mxu1 }
 0x27e   : > { %v1195_v58 = vmul.f32 %v2311_v18, %v2308_v9 }
 0x280   : > { %1319 = vmatmul.f32.gmra.mxu0 %v1195_v58 }
 0x283   : > { %v1115_v20 = vpop.f32.mrf.mxu2 }
 0x284   : > { %1551 = vmatmul.msk.f32.gmra.mxu3 %vm1124_vm7, %v1115_v20 }
 0x285   : > { %v2317_v23 = vpop.f32.mrf.mxu1 }
 0x286   : > { %v1196_v14 = vmul.f32 %v2320_v8, %v2317_v23 }
 0x288   : > { %1322 = vmatmul.f32.gmra.mxu0 %v1196_v14 }
 0x28b   : > { %v1118_v46 = vpop.f32.mrf.mxu2 }
 0x28c   : > { %1552 = vmatmul.msk.f32.gmra.mxu3 %vm1124_vm7, %v1118_v46 }
 0x28d   : > { %v1056_v6 = vpop.f32.mrf.mxu1 }
 0x28e   : > { %v1197_v30 = vmul.f32 %v2327_v32, %v1056_v6 }
 0x290   : > { %1325 = vmatmul.f32.gmra.mxu0 %v1197_v30 }
 0x293   : > { %v1121_v11 = vpop.f32.mrf.mxu2 }
 0x294   : > { %1553 = vmatmul.msk.f32.gmra.mxu3 %vm1124_vm7, %v1121_v11 }
 0x299   : > { %v1223_v21 = vpop.f32.mrf.mxu1 }
 0x29c   : > { %1263 = vmatmul.f32.vlgmr.msrb.gmra.mxu3 %v2268_v27  ;;  %v477_v27 = vld [vmem:[#allocation5 + $0x1b0] sm:$0xff] }
 0x29d   : > { %1571 = vmatpush.msrb.mxu2 %v477_v27  ;;  %1338 = vmatpush.msra.mxu1 %v477_v27 }
 0x29f   : > { %1572 = vmatpush.msrb.mxu2 %v476_v25  ;;  %1339 = vmatpush.msra.mxu1 %v476_v25 }
 0x2a1   : > { %v1226_v53 = vpop.f32.mrf.mxu1 }
 0x2a4   : > { %1266 = vmatmul.f32.gmra.mxu3 %v2276_v1  ;;  %v475_v1 = vld [vmem:[#allocation5 + $0x1a0] sm:$0xff] }
 0x2a5   : > { %1573 = vmatpush.msrb.mxu2 %v475_v1  ;;  %1340 = vmatpush.msra.mxu1 %v475_v1 }
 0x2a7   : > { %1574 = vmatpush.msrb.mxu2 %v474_v39  ;;  %1341 = vmatpush.msra.mxu1 %v474_v39 }
 0x2ac   : > { %1269 = vmatmul.f32.gmra.mxu3 %v2284_v10  ;;  %v473_v10 = vld [vmem:[#allocation5 + $0x190] sm:$0xff] }
 0x2ad   : > { %1342 = vmatpush.msra.mxu1 %v473_v10  ;;  %1575 = vmatpush.msrb.mxu2 %v473_v10 }
 0x2af   : > { %1343 = vmatpush.msra.mxu1 %v472_v36  ;;  %1576 = vmatpush.msrb.mxu2 %v472_v36 }
 0x2b1   : > { %1344 = vmatpush.msra.mxu1 %v471_v37  ;;  %1577 = vmatpush.msrb.mxu2 %v471_v37 }
 0x2b4   : > { %1272 = vmatmul.f32.gmra.mxu3 %v2292_v44 }
 0x2bc   : > { %1275 = vmatmul.f32.gmra.mxu3 %v2300_v59 }
 0x2c4   : > { %1278 = vmatmul.f32.gmra.mxu3 %v2308_v9 }
 0x2cc   : > { %1281 = vmatmul.f32.gmra.mxu3 %v2317_v23 }
 0x2d4   : > { %1284 = vmatmul.f32.gmra.mxu3 %v1056_v6 }
 0x2df   : > { %v1166_v38 = vpop.f32.mrf.mxu3 }
 0x2e0   : > { %v1198_v40 = vmul.f32 %v2271_v3, %v1166_v38 }
 0x2e2   : > { %1345 = vmatmul.f32.vlgmr.msra.gmra.mxu1 %v1198_v40 }
 0x2e7   : > { %v1169_v41 = vpop.f32.mrf.mxu3 }
 0x2e8   : > { %v1199_v13 = vmul.f32 %v2279_v54, %v1169_v41 }
 0x2ea   : > { %1348 = vmatmul.f32.vlgmr.msrb.gmra.mxu2 %v1199_v13 }
 0x2ef   : > { %v1172_v42 = vpop.f32.mrf.mxu3 }
 0x2f0   : > { %v1200_v43 = vmul.f32 %v2287_v35, %v1172_v42 }
 0x2f2   : > { %1351 = vmatmul.f32.gmra.mxu2 %v1200_v43 }
 0x2f7   : > { %v1175_v44 = vpop.f32.mrf.mxu3 }
 0x2f8   : > { %v1201_v45 = vmul.f32 %v2295_v50, %v1175_v44  ;;  %v1229_v50 = vpop.f32.mrf.mxu1 }
 0x2fa   : > { %1354 = vmatmul.f32.gmra.mxu2 %v1201_v45 }
 0x2ff   : > { %v1178_v47 = vpop.f32.mrf.mxu3 }
 0x300   : > { %v1202_v48 = vmul.f32 %v2303_v60, %v1178_v47  ;;  %v1232_v55 = vpop.f32.mrf.mxu1  ;;  %v1305_v60 = vpop.f32.mrf.mxu0 }
 0x302   : > { %1357 = vmatmul.f32.gmra.mxu2 %v1202_v48 }
 0x307   : > { %v1181_v51 = vpop.f32.mrf.mxu3 }
 0x308   : > { %v1203_v3 = vmul.f32 %v2311_v18, %v1181_v51  ;;  %v1235_v56 = vpop.f32.mrf.mxu1  ;;  %v1308_v4 = vpop.f32.mrf.mxu0 }
 0x30a   : > { %1360 = vmatmul.f32.gmra.mxu2 %v1203_v3 }
 0x30f   : > { %v1184_v17 = vpop.f32.mrf.mxu3 }
 0x310   : > { %v1204_v54 = vmul.f32 %v2320_v8, %v1184_v17  ;;  %v1238_v24 = vpop.f32.mrf.mxu1  ;;  %v1311_v9 = vpop.f32.mrf.mxu0 }
 0x312   : > { %1363 = vmatmul.f32.gmra.mxu2 %v1204_v54 }
 0x317   : > { %v1187_v35 = vpop.f32.mrf.mxu3 }
 0x318   : > { %v1205_v52 = vmul.f32 %v2327_v32, %v1187_v35  ;;  %v1241_v57 = vpop.f32.mrf.mxu1  ;;  %v1314_v15 = vpop.f32.mrf.mxu0 }
 0x31a   : > { %1366 = vmatmul.f32.gmra.mxu2 %v1205_v52 }
 0x31f   : > { %v1264_v59 = vpop.f32.mrf.mxu3 }
 0x320   : > { %v1244_v49 = vpop.f32.mrf.mxu1  ;;  %v1265_v61 = vadd.f32 %v1264_v59, %v1223_v21  ;;  %v1317_v6 = vpop.f32.mrf.mxu0 }
 0x322   : > { %v1306_v63 = vadd.f32 %v1305_v60, %v1265_v61 }
 0x327   : > { %v1267_v62 = vpop.f32.mrf.mxu3 }
 0x328   : > { %v1268_v7 = vadd.f32 %v1267_v62, %v1226_v53  ;;  %v1320_v33 = vpop.f32.mrf.mxu0 }
 0x32a   : > { %v1309_v12 = vadd.f32 %v1308_v4, %v1268_v7 }
 0x32f   : > { %v1270_v5 = vpop.f32.mrf.mxu3 }
 0x330   : > { %v1271_v20 = vadd.f32 %v1270_v5, %v1229_v50  ;;  %v1323_v36 = vpop.f32.mrf.mxu0 }
 0x332   : > { %v1312_v23 = vadd.f32 %v1311_v9, %v1271_v20 }
 0x337   : > { %v1273_v58 = vpop.f32.mrf.mxu3 }
 0x338   : > { %v1274_v22 = vadd.f32 %v1273_v58, %v1232_v55  ;;  %v1326_v42 = vpop.f32.mrf.mxu0 }
 0x33a   : > { %v1315_v26 = vadd.f32 %v1314_v15, %v1274_v22 }
 0x33f   : > { %v1276_v46 = vpop.f32.mrf.mxu3 }
 0x340   : > { %v1277_v11 = vadd.f32 %v1276_v46, %v1235_v56 }
 0x342   : > { %v1318_v31 = vadd.f32 %v1317_v6, %v1277_v11 }
 0x347   : > { %v1279_v2 = vpop.f32.mrf.mxu3 }
 0x348   : > { %v1280_v34 = vadd.f32 %v1279_v2, %v1238_v24 }
 0x34a   : > { %v1321_v25 = vadd.f32 %v1320_v33, %v1280_v34 }
 0x34f   : > { %v1282_v27 = vpop.f32.mrf.mxu3 }
 0x350   : > { %v1283_v10 = vadd.f32 %v1282_v27, %v1241_v57 }
 0x352   : > { %v1324_v37 = vadd.f32 %v1323_v36, %v1283_v10 }
 0x357   : > { %v1285_v38 = vpop.f32.mrf.mxu3 }
 0x358   : > { %v1286_v13 = vadd.f32 %v1285_v38, %v1244_v49 }
 0x35a   : > { %v1327_v43 = vadd.f32 %v1326_v42, %v1286_v13 }
 0x35f   : > { %v1346_v0 = vpop.f32.mrf.mxu1 }
 0x360   : > { %v1347_v29 = vadd.f32 %v1346_v0, %v1306_v63 }
 0x362   : > { %1370 = vst [vmem:[%s2353_s21] sm:$0xff] %v1347_v29 }
 0x36d   : > { %v1349_v18 = vpop.f32.mrf.mxu2 }
 0x36e   : > { %v1350_v19 = vadd.f32 %v1349_v18, %v1309_v12 }
 0x370   : > { %1371 = vst [vmem:[%s2353_s21 + $0x8] sm:$0xff] %v1350_v19 }
 0x375   : > { %v1352_v8 = vpop.f32.mrf.mxu2 }
 0x376   : > { %v1353_v14 = vadd.f32 %v1352_v8, %v1312_v23 }
 0x378   : > { %1372 = vst [vmem:[%s2353_s21 + $0x10] sm:$0xff] %v1353_v14 }
 0x37d   : > { %v1355_v32 = vpop.f32.mrf.mxu2 }
 0x37e   : > { %v1356_v30 = vadd.f32 %v1355_v32, %v1315_v26 }
 0x380   : > { %1373 = vst [vmem:[%s2353_s21 + $0x18] sm:$0xff] %v1356_v30 }
 0x385   : > { %v1358_v16 = vpop.f32.mrf.mxu2 }
 0x386   : > { %v1359_v28 = vadd.f32 %v1358_v16, %v1318_v31 }
 0x388   : > { %1374 = vst [vmem:[%s2353_s21 + $0x20] sm:$0xff] %v1359_v28 }
 0x38d   : > { %v1361_v1 = vpop.f32.mrf.mxu2 }
 0x38e   : > { %v1362_v39 = vadd.f32 %v1361_v1, %v1321_v25 }
 0x390   : > { %1375 = vst [vmem:[%s2353_s21 + $0x28] sm:$0xff] %v1362_v39 }
 0x395   : > { %v1364_v40 = vpop.f32.mrf.mxu2 }
 0x396   : > { %v1365_v41 = vadd.f32 %v1364_v40, %v1324_v37 }
 0x398   : > { %1376 = vst [vmem:[%s2353_s21 + $0x30] sm:$0xff] %v1365_v41 }
 0x39d   : > { %v1367_v44 = vpop.f32.mrf.mxu2 }
 0x39e   : > { %v1368_v45 = vadd.f32 %v1367_v44, %v1327_v43 }
 0x3a0   : > { %1377 = vst [vmem:[%s2353_s21 + $0x38] sm:$0xff] %v1368_v45 }
 0x3a1   : > { %1795 = shalt.err (!%p1792_p12)
}
 0x3a2   : > { %s1844_s15 = smov 128   ;;  %s1845_s20 = smov 8  }
 0x3a3   : > { %1587 = dma.vmem_to_hbm [thread:$0]  (%p1961_p7), %s1392_s23, 1024, %s1394_s10, %s1379_s14, %s1844_s15, %s1844_s15, %s1845_s20  }
 0x3a4 PF: > { %s1408_s16 = sand.u32 1, %s1826_s27   ;;  %p2423_p13 = scmp.ge.s32.totalorder %s1838_s30, 2 }
 0x3a5   : > { %s1409_s21 = scalar_lea.sflag [#allocation4], %s1408_s16 }
 0x3a6   : > { %p1598_p0 = pnand %p2423_p13, %p1926_p6 }
 0x3a8   : > { %p1599_p3 = pneg %p1598_p0 }
 0x3aa   : > { %1821 = dma.done.wait (%p1599_p3), %s1409_s21, 1024  }
 0x3ab   : > { %1823 = vsyncadd (%p1599_p3), %s1409_s21, 4294966272  ;;  %s2424_s30 = sld [smem:[#allocation12_spill]]  ;;  %s2427_s27 = smov %s1830_s28 }
 0x3ac   : > { %s2425_s11 = sld [smem:[#allocation11_spill]] }
 0x3ad   : > { %s2426_s29 = sld [smem:[#allocation13_spill]] }
 0x3b1   : > { %p22_p5 = scmp.ge.s32.totalorder %s2424_s30, 4  }
 0x3b2   : > { %s2428_s28 = smov %s2425_s11 }
 0x3b3   :  { %24 = sbr.rel (!%p22_p5) target bundleno = 8 (0x8), region = 110 }
 0x3b8   :  { %1415 = vsyncpa [#allocation3], 1 }
 0x3b9   :  { %1417 = vsyncpa [#allocation3 + $0x1], 1 }
 0x3ba   :  { %1418 = vsyncpa [#allocation6], 1 }
 0x3bb   :  { %1419 = vsyncpa [#allocation4], 1 }
 0x3bc   :  { %1421 = vsyncpa [#allocation4 + $0x1], 1 }

</bundles_post_ra>
